<compile_context>
chip_gen: v6e
topology: v6e:2x2x1
jax: 0.10.0
libtpu: 0.0.40
codegen_flags: <defaults>
</compile_context>

<pallas_src>
import math
from functools import partial

import jax
import jax.numpy as jnp
from jax.experimental import pallas as pl
from jax.experimental.pallas import tpu as pltpu


def _self_attention_kernel(
    v_in_ref, k_in_ref, q_in_ref, mask_ref,
    wv_ref, bv_ref, wk_ref, bk_ref, wq_ref, bq_ref, wo_ref, bo_ref,
    *out_and_scratch,
    heads, head_dim, embed_size, b_tile, value_len, key_len, query_len,
    mxu_dtype, return_attention, approx_recip,
):
    if return_attention:
        out_ref, attn_ref, ctx_ref = out_and_scratch
    else:
        out_ref, ctx_ref = out_and_scratch
        attn_ref = None

    E = embed_size

    # ---- fused input projections: one (B*L, E) x (E, E) MXU matmul each.
    # Inputs/weights may already be bf16 (cast once in the wrapper), so these
    # run bf16-in / f32-accumulate on the MXU.
    v = jnp.dot(v_in_ref[...].reshape(b_tile * value_len, E), wv_ref[...],
                preferred_element_type=jnp.float32) + bv_ref[0]
    k = jnp.dot(k_in_ref[...].reshape(b_tile * key_len, E), wk_ref[...],
                preferred_element_type=jnp.float32) + bk_ref[0]
    q = jnp.dot(q_in_ref[...].reshape(b_tile * query_len, E), wq_ref[...],
                preferred_element_type=jnp.float32) + bq_ref[0]

    # Fold the softmax scale into q once (reference divides by sqrt(embed_size)).
    q = q * jnp.float32(1.0 / math.sqrt(float(embed_size)))

    compute_dtype = jnp.float32 if mxu_dtype is None else mxu_dtype
    v3 = v.reshape(b_tile, value_len, E).astype(compute_dtype)
    k3 = k.reshape(b_tile, key_len, E).astype(compute_dtype)
    q3 = q.reshape(b_tile, query_len, E).astype(compute_dtype)

    # Additive mask bias, computed once per program.  Mask may be f32/int8/bool;
    # "== 0" means masked, matching masked_fill(mask == 0, -1e20).
    m = mask_ref[...]
    if m.dtype != jnp.float32:
        m = m.astype(jnp.float32)
    bias = jnp.where(m == 0.0, jnp.float32(-1e20), jnp.float32(0.0))

    attn_heads = [] if return_attention else None

    for h in range(heads):                       # static unroll, heads is small
        sl = slice(h * head_dim, (h + 1) * head_dim)
        qh = q3[:, :, sl]                        # (B, Q, d)
        kh = k3[:, :, sl]                        # (B, K, d)
        vh = v3[:, :, sl]                        # (B, K, d)

        # 'bqd,bkd->bqk' contracts the last dims directly -- no explicit .T
        energy = jnp.einsum('bqd,bkd->bqk', qh, kh,
                            preferred_element_type=jnp.float32)
        scaled = energy + bias

        # softmax along the key axis
        mmax = jnp.max(scaled, axis=-1, keepdims=True)
        p = jnp.exp(scaled - mmax)
        denom = jnp.sum(p, axis=-1, keepdims=True)
        attn = p * pl.reciprocal(denom, approx=approx_recip)

        if attn_heads is not None:
            attn_heads.append(attn)

        ctx = jnp.einsum('bqk,bkd->bqd', attn.astype(compute_dtype), vh,
                         preferred_element_type=jnp.float32)     # (B, Q, d)

        # Stage this head's context at lane offset h*head_dim of a persistent
        # VMEM scratch (instead of a K=head_dim matmul against wo[sl, :]).
        ctx_ref[:, sl] = ctx.reshape(b_tile * query_len, head_dim)

    if attn_heads is not None:
        # Single store of the whole (B, H, Q, K) attention block.
        attn_ref[...] = jnp.stack(attn_heads, axis=1).astype(attn_ref.dtype)

    # ---- single full-depth (B*Q, E) x (E, E) output projection.
    ctx_all = ctx_ref[...].astype(compute_dtype)
    out = jnp.dot(ctx_all, wo_ref[...],
                  preferred_element_type=jnp.float32) + bo_ref[0]
    out_ref[...] = out.reshape(b_tile, query_len, E).astype(out_ref.dtype)


def _vmem_capacity_bytes():
    try:
        return int(pltpu.get_tpu_info().vmem_capacity_bytes)
    except Exception:
        return 64 * 1024 * 1024     # conservative (v7x per-core VMEM)


def _estimate_vmem_bytes(b_tile, *, value_len, key_len, query_len, embed_size,
                         heads, return_attention, in_bytes, mask_bytes,
                         attn_bytes):
    E = embed_size
    db = 2  # pipeline double-buffering for blocked operands
    seq_in = db * b_tile * (value_len + key_len + query_len) * E * in_bytes
    mask = db * b_tile * query_len * key_len * mask_bytes
    out = db * b_tile * query_len * E * 4
    attn = (db * b_tile * heads * query_len * key_len * attn_bytes
            if return_attention else 0)
    weights = 2 * 4 * E * E * in_bytes + 2 * 4 * E * 4  # conservative (double-buffered)
    scratch = b_tile * query_len * E * 4
    return seq_in + mask + out + attn + weights + scratch


def _pick_b_tile(N, budget_bytes, est_fn):
    """Largest divisor of N that fits the VMEM budget while keeping at least
    2 grid steps when possible (so both v7x TensorCores get work)."""
    best = 1
    for cand in range(1, N + 1):
        if N % cand:
            continue
        if N >= 2 and (N // cand) < 2:
            continue
        if est_fn(cand) <= budget_bytes:
            best = cand
    return best


def self_attention(values, keys, query, mask, params, *, embed_size, heads,
                   b_tile=None, return_attention=True, mxu_dtype=None,
                   attn_dtype=jnp.float32, approx_recip=True):
    """Pallas SelfAttention forward. Returns (out, attention_or_None)."""
    head_dim = embed_size // heads
    assert head_dim * heads == embed_size
    N, value_len, _ = values.shape
    key_len = keys.shape[1]
    query_len = query.shape[1]

    wv, bv, wk, bk, wq, bq, wo, bo = params
    bv2, bk2, bq2, bo2 = (b.reshape(1, embed_size).astype(jnp.float32)
                          for b in (bv, bq, bq, bo))
    # (re-do correctly; generator above consumed in order -- build explicitly)
    bv2 = bv.reshape(1, embed_size).astype(jnp.float32)
    bk2 = bk.reshape(1, embed_size).astype(jnp.float32)
    bq2 = bq.reshape(1, embed_size).astype(jnp.float32)
    bo2 = bo.reshape(1, embed_size).astype(jnp.float32)

    if mxu_dtype is not None:
        # bf16-in / f32-accumulate for ALL MXU work; also halves input/weight DMA.
        values = values.astype(mxu_dtype)
        keys = keys.astype(mxu_dtype)
        query = query.astype(mxu_dtype)
        wv, wk, wq, wo = (w.astype(mxu_dtype) for w in (wv, wk, wq, wo))

    in_bytes = jnp.dtype(values.dtype).itemsize
    mask_bytes = jnp.dtype(mask.dtype).itemsize
    attn_bytes = jnp.dtype(attn_dtype).itemsize

    # Generation-aware VMEM budget (v5e/v6e: 128 MiB, v7x: 64 MiB per core).
    vmem_cap = _vmem_capacity_bytes()
    vmem_limit = max(32 * 1024 * 1024, min(int(vmem_cap * 0.75), 100 * 1024 * 1024))

    est = partial(_estimate_vmem_bytes, value_len=value_len, key_len=key_len,
                  query_len=query_len, embed_size=embed_size, heads=heads,
                  return_attention=return_attention, in_bytes=in_bytes,
                  mask_bytes=mask_bytes, attn_bytes=attn_bytes)
    if b_tile is None:
        b_tile = _pick_b_tile(N, int(vmem_limit * 0.8), est)
    assert N % b_tile == 0
    steps = N // b_tile

    # Advisory cost estimate for XLA scheduling around the custom call.
    proj_flops = 2 * embed_size * embed_size * N * (value_len + key_len + 2 * query_len)
    attn_flops = 4 * N * heads * query_len * key_len * head_dim
    softmax_flops = 6 * N * heads * query_len * key_len
    transcendentals = N * heads * query_len * key_len
    bytes_accessed = (
        N * (value_len + key_len + query_len) * embed_size * in_bytes
        + N * query_len * key_len * mask_bytes
        + 4 * embed_size * embed_size * in_bytes + 4 * embed_size * 4
        + N * query_len * embed_size * 4
        + (N * heads * query_len * key_len * attn_bytes if return_attention else 0)
    )
    cost = pl.CostEstimate(flops=proj_flops + attn_flops + softmax_flops,
                           transcendentals=transcendentals,
                           bytes_accessed=bytes_accessed)

    kernel = partial(
        _self_attention_kernel,
        heads=heads, head_dim=head_dim, embed_size=embed_size,
        b_tile=b_tile, value_len=value_len, key_len=key_len,
        query_len=query_len, mxu_dtype=mxu_dtype,
        return_attention=return_attention, approx_recip=approx_recip,
    )

    def _call(single_buffer_consts):
        def const_spec(shape):
            if single_buffer_consts:
                return pl.BlockSpec(shape, lambda n: (0, 0),
                                    pipeline_mode=pl.Buffered(buffer_count=1))
            return pl.BlockSpec(shape, lambda n: (0, 0))

        seq_spec = lambda L: pl.BlockSpec((b_tile, L, embed_size),
                                          lambda n: (n, 0, 0))
        w_spec = const_spec((embed_size, embed_size))
        b_spec = const_spec((1, embed_size))

        in_specs = [
            seq_spec(value_len),                                          # values
            seq_spec(key_len),                                            # keys
            seq_spec(query_len),                                          # query
            pl.BlockSpec((b_tile, query_len, key_len), lambda n: (n, 0, 0)),  # mask
            w_spec, b_spec,                                               # values proj
            w_spec, b_spec,                                               # keys proj
            w_spec, b_spec,                                               # queries proj
            w_spec, b_spec,                                               # fc_out
        ]

        out_sds = jax.ShapeDtypeStruct((N, query_len, embed_size), jnp.float32)
        out_spec = pl.BlockSpec((b_tile, query_len, embed_size),
                                lambda n: (n, 0, 0))

        if return_attention:
            out_shape = (
                out_sds,
                jax.ShapeDtypeStruct((N, heads, query_len, key_len), attn_dtype),
            )
            out_specs = [
                out_spec,
                pl.BlockSpec((b_tile, heads, query_len, key_len),
                             lambda n: (n, 0, 0, 0)),
            ]
        else:
            out_shape = out_sds
            out_specs = out_spec

        return pl.pallas_call(
            kernel,
            out_shape=out_shape,
            grid_spec=pltpu.PrefetchScalarGridSpec(
                num_scalar_prefetch=0,
                grid=(steps,),
                in_specs=in_specs,
                out_specs=out_specs,
                scratch_shapes=[
                    pltpu.VMEM((b_tile * query_len, embed_size), jnp.float32),
                ],
            ),
            compiler_params=pltpu.CompilerParams(
                dimension_semantics=("parallel",),
                vmem_limit_bytes=vmem_limit,
            ),
            cost_estimate=cost,
        )(values, keys, query, mask, wv, bv2, wk, bk2, wq, bq2, wo, bo2)

    try:
        result = _call(True)
    except Exception:
        # pipeline_mode=pl.Buffered(1) not honored by this jax version; fall
        # back to default double-buffered constant operands.
        result = _call(False)

    if return_attention:
        out, attn = result
        return out, attn
    return result, None


def _reference(values, keys, query, mask, params, *, embed_size, heads):
    """Pure-JAX reference mirroring the PyTorch forward."""
    head_dim = embed_size // heads
    wv, bv, wk, bk, wq, bq, wo, bo = params
    N, vl, _ = values.shape
    kl, ql = keys.shape[1], query.shape[1]

    v = values @ wv + bv
    k = keys @ wk + bk
    q = query @ wq + bq
    v = v.reshape(N, vl, heads, head_dim)
    k = k.reshape(N, kl, heads, head_dim)
    q = q.reshape(N, ql, heads, head_dim)
    energy = jnp.einsum("nqhd,nkhd->nhqk", q, k)
    energy = jnp.where(mask[:, None, :, :] == 0.0, -1e20, energy)
    attn = jax.nn.softmax(energy / math.sqrt(embed_size), axis=3)
    out = jnp.einsum("nhql,nlhd->nqhd", attn, v).reshape(N, ql, embed_size)
    out = out @ wo + bo
    return out, attn


if __name__ == "__main__":
    N = 2
    seq = 8
    embed_size = 32
    heads = 4

    key = jax.random.PRNGKey(0)
    ks = jax.random.split(key, 12)

    def lin_init(kw, kb):
        bound = 1.0 / math.sqrt(embed_size)
        w = jax.random.uniform(kw, (embed_size, embed_size), jnp.float32, -bound, bound)
        b = jax.random.uniform(kb, (embed_size,), jnp.float32, -bound, bound)
        return w, b

    wv, bv = lin_init(ks[0], ks[1])
    wk, bk = lin_init(ks[2], ks[3])
    wq, bq = lin_init(ks[4], ks[5])
    wo, bo = lin_init(ks[6], ks[7])
    params = (wv, bv, wk, bk, wq, bq, wo, bo)

    values = jax.random.normal(ks[8], (N, seq, embed_size), jnp.float32)
    keys_x = jax.random.normal(ks[9], (N, seq, embed_size), jnp.float32)
    query = jax.random.normal(ks[10], (N, seq, embed_size), jnp.float32)
    # causal-ish mask (1.0 keep / 0.0 masked), broadcast over heads
    mask = jnp.tril(jnp.ones((seq, seq), jnp.float32))[None].repeat(N, axis=0)

    ref_out, ref_attn = _reference(
        values, keys_x, query, mask, params, embed_size=embed_size, heads=heads
    )

    # Main path: f32, attention matrix returned.
    out, attn = self_attention(
        values, keys_x, query, mask, params, embed_size=embed_size, heads=heads
    )
    out, attn = jax.block_until_ready((out, attn))
    assert jnp.allclose(out, ref_out, rtol=2e-3, atol=2e-3)
    assert jnp.allclose(attn, ref_attn, rtol=2e-3, atol=2e-3)

    # Attention-free path with a compact int8 mask (v5e HBM-traffic relief).
    out_only, _ = self_attention(
        values, keys_x, query, mask.astype(jnp.int8), params,
        embed_size=embed_size, heads=heads, return_attention=False,
    )
    out_only = jax.block_until_ready(out_only)
    assert jnp.allclose(out_only, ref_out, rtol=2e-3, atol=2e-3)

    # bf16 MXU inputs/weights + bf16 attention writeback (v6e/v7x path);
    # accumulation stays f32.
    out_bf16, attn_bf16 = self_attention(
        values, keys_x, query, mask, params, embed_size=embed_size, heads=heads,
        mxu_dtype=jnp.bfloat16, attn_dtype=jnp.bfloat16,
    )
    out_bf16, attn_bf16 = jax.block_until_ready((out_bf16, attn_bf16))
    assert jnp.allclose(out_bf16, ref_out, rtol=5e-2, atol=5e-2)
    assert jnp.allclose(attn_bf16.astype(jnp.float32), ref_attn, rtol=5e-2, atol=5e-2)

    print("KERNEL_OK")
</pallas_src>

<mosaic_0001>
module attributes {stable_mosaic.version = 11 : i64} {
  func.func @_self_attention_kernel(%arg0: i32, %arg1: memref<1x8x32xf32, #tpu.memory_space<vmem>>, %arg2: memref<1x8x32xf32, #tpu.memory_space<vmem>>, %arg3: memref<1x8x32xf32, #tpu.memory_space<vmem>>, %arg4: memref<1x8x8xf32, #tpu.memory_space<vmem>>, %arg5: memref<32x32xf32, #tpu.memory_space<vmem>>, %arg6: memref<1x32xf32, #tpu.memory_space<vmem>>, %arg7: memref<32x32xf32, #tpu.memory_space<vmem>>, %arg8: memref<1x32xf32, #tpu.memory_space<vmem>>, %arg9: memref<32x32xf32, #tpu.memory_space<vmem>>, %arg10: memref<1x32xf32, #tpu.memory_space<vmem>>, %arg11: memref<32x32xf32, #tpu.memory_space<vmem>>, %arg12: memref<1x32xf32, #tpu.memory_space<vmem>>, %arg13: memref<1x8x32xf32, #tpu.memory_space<vmem>>, %arg14: memref<1x4x8x8xf32, #tpu.memory_space<vmem>>, %arg15: memref<8x32xf32, #tpu.memory_space<vmem>>) attributes {dimension_semantics = [#tpu.dimension_semantics<parallel>], iteration_bounds = array<i64: 2>, scalar_prefetch = 0 : i64, scratch_operands = 1 : i64, tpu.core_type = #tpu.core_type<tc>, window_params = [{transform_indices = @transform_0, window_bounds = array<i64: 1, 8, 32>}, {transform_indices = @transform_1, window_bounds = array<i64: 1, 8, 32>}, {transform_indices = @transform_2, window_bounds = array<i64: 1, 8, 32>}, {transform_indices = @transform_3, window_bounds = array<i64: 1, 8, 8>}, {pipeline_mode = #tpu.pipeline_mode<synchronous>, transform_indices = @transform_4, window_bounds = array<i64: 32, 32>}, {pipeline_mode = #tpu.pipeline_mode<synchronous>, transform_indices = @transform_5, window_bounds = array<i64: 1, 32>}, {pipeline_mode = #tpu.pipeline_mode<synchronous>, transform_indices = @transform_6, window_bounds = array<i64: 32, 32>}, {pipeline_mode = #tpu.pipeline_mode<synchronous>, transform_indices = @transform_7, window_bounds = array<i64: 1, 32>}, {pipeline_mode = #tpu.pipeline_mode<synchronous>, transform_indices = @transform_8, window_bounds = array<i64: 32, 32>}, {pipeline_mode = #tpu.pipeline_mode<synchronous>, transform_indices = @transform_9, window_bounds = array<i64: 1, 32>}, {pipeline_mode = #tpu.pipeline_mode<synchronous>, transform_indices = @transform_10, window_bounds = array<i64: 32, 32>}, {pipeline_mode = #tpu.pipeline_mode<synchronous>, transform_indices = @transform_11, window_bounds = array<i64: 1, 32>}, {transform_indices = @transform_12, window_bounds = array<i64: 1, 8, 32>}, {transform_indices = @transform_13, window_bounds = array<i64: 1, 4, 8, 8>}]} {
    %c0 = arith.constant 0 : index
    %c0_0 = arith.constant 0 : index
    %c0_1 = arith.constant 0 : index
    %0 = vector.load %arg1[%c0, %c0_0, %c0_1] : memref<1x8x32xf32, #tpu.memory_space<vmem>>, vector<1x8x32xf32>
    %1 = vector.shape_cast %0 : vector<1x8x32xf32> to vector<8x32xf32>
    %c0_2 = arith.constant 0 : index
    %c0_3 = arith.constant 0 : index
    %2 = vector.load %arg5[%c0_2, %c0_3] : memref<32x32xf32, #tpu.memory_space<vmem>>, vector<32x32xf32>
    %cst = arith.constant dense<0.000000e+00> : vector<8x32xf32>
    %3 = tpu.matmul %1, %2, %cst {dimension_numbers = #tpu.dot_dimension_numbers<[1], [0], [0], [1], [0, 0, 1, 1], [], []>} : vector<8x32xf32>, vector<32x32xf32>, vector<8x32xf32> -> vector<8x32xf32>
    %c0_4 = arith.constant 0 : index
    %c0_5 = arith.constant 0 : index
    %4 = vector.load %arg6[%c0_4, %c0_5] : memref<1x32xf32, #tpu.memory_space<vmem>>, vector<1x32xf32>
    %5 = vector.shape_cast %4 : vector<1x32xf32> to vector<32xf32>
    %6 = vector.shape_cast %5 : vector<32xf32> to vector<1x32xf32>
    %7 = vector.broadcast %6 : vector<1x32xf32> to vector<8x32xf32>
    %8 = arith.addf %3, %7 : vector<8x32xf32>
    %c0_6 = arith.constant 0 : index
    %c0_7 = arith.constant 0 : index
    %c0_8 = arith.constant 0 : index
    %9 = vector.load %arg2[%c0_6, %c0_7, %c0_8] : memref<1x8x32xf32, #tpu.memory_space<vmem>>, vector<1x8x32xf32>
    %10 = vector.shape_cast %9 : vector<1x8x32xf32> to vector<8x32xf32>
    %c0_9 = arith.constant 0 : index
    %c0_10 = arith.constant 0 : index
    %11 = vector.load %arg7[%c0_9, %c0_10] : memref<32x32xf32, #tpu.memory_space<vmem>>, vector<32x32xf32>
    %cst_11 = arith.constant dense<0.000000e+00> : vector<8x32xf32>
    %12 = tpu.matmul %10, %11, %cst_11 {dimension_numbers = #tpu.dot_dimension_numbers<[1], [0], [0], [1], [0, 0, 1, 1], [], []>} : vector<8x32xf32>, vector<32x32xf32>, vector<8x32xf32> -> vector<8x32xf32>
    %c0_12 = arith.constant 0 : index
    %c0_13 = arith.constant 0 : index
    %13 = vector.load %arg8[%c0_12, %c0_13] : memref<1x32xf32, #tpu.memory_space<vmem>>, vector<1x32xf32>
    %14 = vector.shape_cast %13 : vector<1x32xf32> to vector<32xf32>
    %15 = vector.shape_cast %14 : vector<32xf32> to vector<1x32xf32>
    %16 = vector.broadcast %15 : vector<1x32xf32> to vector<8x32xf32>
    %17 = arith.addf %12, %16 : vector<8x32xf32>
    %c0_14 = arith.constant 0 : index
    %c0_15 = arith.constant 0 : index
    %c0_16 = arith.constant 0 : index
    %18 = vector.load %arg3[%c0_14, %c0_15, %c0_16] : memref<1x8x32xf32, #tpu.memory_space<vmem>>, vector<1x8x32xf32>
    %19 = vector.shape_cast %18 : vector<1x8x32xf32> to vector<8x32xf32>
    %c0_17 = arith.constant 0 : index
    %c0_18 = arith.constant 0 : index
    %20 = vector.load %arg9[%c0_17, %c0_18] : memref<32x32xf32, #tpu.memory_space<vmem>>, vector<32x32xf32>
    %cst_19 = arith.constant dense<0.000000e+00> : vector<8x32xf32>
    %21 = tpu.matmul %19, %20, %cst_19 {dimension_numbers = #tpu.dot_dimension_numbers<[1], [0], [0], [1], [0, 0, 1, 1], [], []>} : vector<8x32xf32>, vector<32x32xf32>, vector<8x32xf32> -> vector<8x32xf32>
    %c0_20 = arith.constant 0 : index
    %c0_21 = arith.constant 0 : index
    %22 = vector.load %arg10[%c0_20, %c0_21] : memref<1x32xf32, #tpu.memory_space<vmem>>, vector<1x32xf32>
    %23 = vector.shape_cast %22 : vector<1x32xf32> to vector<32xf32>
    %24 = vector.shape_cast %23 : vector<32xf32> to vector<1x32xf32>
    %25 = vector.broadcast %24 : vector<1x32xf32> to vector<8x32xf32>
    %26 = arith.addf %21, %25 : vector<8x32xf32>
    %cst_22 = arith.constant 0.176776692 : f32
    %27 = vector.broadcast %cst_22 : f32 to vector<8x32xf32>
    %28 = arith.mulf %26, %27 : vector<8x32xf32>
    %29 = vector.shape_cast %8 : vector<8x32xf32> to vector<1x8x32xf32>
    %30 = vector.shape_cast %17 : vector<8x32xf32> to vector<1x8x32xf32>
    %31 = vector.shape_cast %28 : vector<8x32xf32> to vector<1x8x32xf32>
    %c0_23 = arith.constant 0 : index
    %c0_24 = arith.constant 0 : index
    %c0_25 = arith.constant 0 : index
    %32 = vector.load %arg4[%c0_23, %c0_24, %c0_25] : memref<1x8x8xf32, #tpu.memory_space<vmem>>, vector<1x8x8xf32>
    %cst_26 = arith.constant 0.000000e+00 : f32
    %33 = vector.broadcast %cst_26 : f32 to vector<1x8x8xf32>
    %34 = arith.cmpf oeq, %32, %33 : vector<1x8x8xf32>
    %cst_27 = arith.constant -1.000000e+20 : f32
    %cst_28 = arith.constant 0.000000e+00 : f32
    %35 = vector.broadcast %cst_27 : f32 to vector<1x8x8xf32>
    %36 = vector.broadcast %cst_28 : f32 to vector<1x8x8xf32>
    %37 = arith.select %34, %35, %36 : vector<1x8x8xi1>, vector<1x8x8xf32>
    %38 = vector.extract_strided_slice %31 {offsets = [0, 0, 0], sizes = [1, 8, 8], strides = [1, 1, 1]} : vector<1x8x32xf32> to vector<1x8x8xf32>
    %39 = vector.extract_strided_slice %30 {offsets = [0, 0, 0], sizes = [1, 8, 8], strides = [1, 1, 1]} : vector<1x8x32xf32> to vector<1x8x8xf32>
    %40 = vector.extract_strided_slice %29 {offsets = [0, 0, 0], sizes = [1, 8, 8], strides = [1, 1, 1]} : vector<1x8x32xf32> to vector<1x8x8xf32>
    "tpu.trace_start"() <{level = 10 : i32, message = "bqd,bkd->bqk"}> : () -> ()
    %cst_29 = arith.constant dense<0.000000e+00> : vector<1x8x8xf32>
    %41 = tpu.matmul %38, %39, %cst_29 {dimension_numbers = #tpu.dot_dimension_numbers<[2], [2], [1], [1], [0, 0, 0, 1, 1, 1], [0], [0]>} : vector<1x8x8xf32>, vector<1x8x8xf32>, vector<1x8x8xf32> -> vector<1x8x8xf32>
    "tpu.trace_stop"() : () -> ()
    %42 = arith.addf %41, %37 : vector<1x8x8xf32>
    %cst_30 = arith.constant dense<0xFF800000> : vector<1x8xf32>
    %43 = vector.multi_reduction <maximumf>, %42, %cst_30 [2] : vector<1x8x8xf32> to vector<1x8xf32>
    %44 = vector.shape_cast %43 : vector<1x8xf32> to vector<1x8x1xf32>
    %45 = vector.broadcast %44 : vector<1x8x1xf32> to vector<1x8x8xf32>
    %46 = arith.subf %42, %45 : vector<1x8x8xf32>
    %47 = math.exp %46 : vector<1x8x8xf32>
    %cst_31 = arith.constant dense<0.000000e+00> : vector<1x8xf32>
    %48 = vector.multi_reduction <add>, %47, %cst_31 [2] : vector<1x8x8xf32> to vector<1x8xf32>
    %49 = vector.shape_cast %48 : vector<1x8xf32> to vector<1x8x1xf32>
    %50 = tpu.reciprocal %49 {approx = true} : vector<1x8x1xf32> -> vector<1x8x1xf32>
    %51 = vector.broadcast %50 : vector<1x8x1xf32> to vector<1x8x8xf32>
    %52 = arith.mulf %47, %51 : vector<1x8x8xf32>
    "tpu.trace_start"() <{level = 10 : i32, message = "bqk,bkd->bqd"}> : () -> ()
    %cst_32 = arith.constant dense<0.000000e+00> : vector<1x8x8xf32>
    %53 = tpu.matmul %52, %40, %cst_32 {dimension_numbers = #tpu.dot_dimension_numbers<[2], [1], [1], [2], [0, 0, 0, 1, 1, 2], [0], [0]>} : vector<1x8x8xf32>, vector<1x8x8xf32>, vector<1x8x8xf32> -> vector<1x8x8xf32>
    "tpu.trace_stop"() : () -> ()
    %54 = vector.shape_cast %53 : vector<1x8x8xf32> to vector<8x8xf32>
    %c0_33 = arith.constant 0 : index
    %c0_34 = arith.constant 0 : index
    %55 = vector.load %arg15[%c0_33, %c0_34] : memref<8x32xf32, #tpu.memory_space<vmem>>, vector<8x8xf32>
    tpu.vector_store %arg15[%c0_33, %c0_34], %54 {strides = array<i32>} : memref<8x32xf32, #tpu.memory_space<vmem>>, vector<8x8xf32>,
    %56 = vector.extract_strided_slice %31 {offsets = [0, 0, 8], sizes = [1, 8, 8], strides = [1, 1, 1]} : vector<1x8x32xf32> to vector<1x8x8xf32>
    %57 = vector.extract_strided_slice %30 {offsets = [0, 0, 8], sizes = [1, 8, 8], strides = [1, 1, 1]} : vector<1x8x32xf32> to vector<1x8x8xf32>
    %58 = vector.extract_strided_slice %29 {offsets = [0, 0, 8], sizes = [1, 8, 8], strides = [1, 1, 1]} : vector<1x8x32xf32> to vector<1x8x8xf32>
    "tpu.trace_start"() <{level = 10 : i32, message = "bqd,bkd->bqk"}> : () -> ()
    %cst_35 = arith.constant dense<0.000000e+00> : vector<1x8x8xf32>
    %59 = tpu.matmul %56, %57, %cst_35 {dimension_numbers = #tpu.dot_dimension_numbers<[2], [2], [1], [1], [0, 0, 0, 1, 1, 1], [0], [0]>} : vector<1x8x8xf32>, vector<1x8x8xf32>, vector<1x8x8xf32> -> vector<1x8x8xf32>
    "tpu.trace_stop"() : () -> ()
    %60 = arith.addf %59, %37 : vector<1x8x8xf32>
    %cst_36 = arith.constant dense<0xFF800000> : vector<1x8xf32>
    %61 = vector.multi_reduction <maximumf>, %60, %cst_36 [2] : vector<1x8x8xf32> to vector<1x8xf32>
    %62 = vector.shape_cast %61 : vector<1x8xf32> to vector<1x8x1xf32>
    %63 = vector.broadcast %62 : vector<1x8x1xf32> to vector<1x8x8xf32>
    %64 = arith.subf %60, %63 : vector<1x8x8xf32>
    %65 = math.exp %64 : vector<1x8x8xf32>
    %cst_37 = arith.constant dense<0.000000e+00> : vector<1x8xf32>
    %66 = vector.multi_reduction <add>, %65, %cst_37 [2] : vector<1x8x8xf32> to vector<1x8xf32>
    %67 = vector.shape_cast %66 : vector<1x8xf32> to vector<1x8x1xf32>
    %68 = tpu.reciprocal %67 {approx = true} : vector<1x8x1xf32> -> vector<1x8x1xf32>
    %69 = vector.broadcast %68 : vector<1x8x1xf32> to vector<1x8x8xf32>
    %70 = arith.mulf %65, %69 : vector<1x8x8xf32>
    "tpu.trace_start"() <{level = 10 : i32, message = "bqk,bkd->bqd"}> : () -> ()
    %cst_38 = arith.constant dense<0.000000e+00> : vector<1x8x8xf32>
    %71 = tpu.matmul %70, %58, %cst_38 {dimension_numbers = #tpu.dot_dimension_numbers<[2], [1], [1], [2], [0, 0, 0, 1, 1, 2], [0], [0]>} : vector<1x8x8xf32>, vector<1x8x8xf32>, vector<1x8x8xf32> -> vector<1x8x8xf32>
    "tpu.trace_stop"() : () -> ()
    %72 = vector.shape_cast %71 : vector<1x8x8xf32> to vector<8x8xf32>
    %c0_39 = arith.constant 0 : index
    %c8 = arith.constant 8 : index
    %73 = vector.load %arg15[%c0_39, %c8] : memref<8x32xf32, #tpu.memory_space<vmem>>, vector<8x8xf32>
    tpu.vector_store %arg15[%c0_39, %c8], %72 {strides = array<i32>} : memref<8x32xf32, #tpu.memory_space<vmem>>, vector<8x8xf32>,
    %74 = vector.extract_strided_slice %31 {offsets = [0, 0, 16], sizes = [1, 8, 8], strides = [1, 1, 1]} : vector<1x8x32xf32> to vector<1x8x8xf32>
    %75 = vector.extract_strided_slice %30 {offsets = [0, 0, 16], sizes = [1, 8, 8], strides = [1, 1, 1]} : vector<1x8x32xf32> to vector<1x8x8xf32>
    %76 = vector.extract_strided_slice %29 {offsets = [0, 0, 16], sizes = [1, 8, 8], strides = [1, 1, 1]} : vector<1x8x32xf32> to vector<1x8x8xf32>
    "tpu.trace_start"() <{level = 10 : i32, message = "bqd,bkd->bqk"}> : () -> ()
    %cst_40 = arith.constant dense<0.000000e+00> : vector<1x8x8xf32>
    %77 = tpu.matmul %74, %75, %cst_40 {dimension_numbers = #tpu.dot_dimension_numbers<[2], [2], [1], [1], [0, 0, 0, 1, 1, 1], [0], [0]>} : vector<1x8x8xf32>, vector<1x8x8xf32>, vector<1x8x8xf32> -> vector<1x8x8xf32>
    "tpu.trace_stop"() : () -> ()
    %78 = arith.addf %77, %37 : vector<1x8x8xf32>
    %cst_41 = arith.constant dense<0xFF800000> : vector<1x8xf32>
    %79 = vector.multi_reduction <maximumf>, %78, %cst_41 [2] : vector<1x8x8xf32> to vector<1x8xf32>
    %80 = vector.shape_cast %79 : vector<1x8xf32> to vector<1x8x1xf32>
    %81 = vector.broadcast %80 : vector<1x8x1xf32> to vector<1x8x8xf32>
    %82 = arith.subf %78, %81 : vector<1x8x8xf32>
    %83 = math.exp %82 : vector<1x8x8xf32>
    %cst_42 = arith.constant dense<0.000000e+00> : vector<1x8xf32>
    %84 = vector.multi_reduction <add>, %83, %cst_42 [2] : vector<1x8x8xf32> to vector<1x8xf32>
    %85 = vector.shape_cast %84 : vector<1x8xf32> to vector<1x8x1xf32>
    %86 = tpu.reciprocal %85 {approx = true} : vector<1x8x1xf32> -> vector<1x8x1xf32>
    %87 = vector.broadcast %86 : vector<1x8x1xf32> to vector<1x8x8xf32>
    %88 = arith.mulf %83, %87 : vector<1x8x8xf32>
    "tpu.trace_start"() <{level = 10 : i32, message = "bqk,bkd->bqd"}> : () -> ()
    %cst_43 = arith.constant dense<0.000000e+00> : vector<1x8x8xf32>
    %89 = tpu.matmul %88, %76, %cst_43 {dimension_numbers = #tpu.dot_dimension_numbers<[2], [1], [1], [2], [0, 0, 0, 1, 1, 2], [0], [0]>} : vector<1x8x8xf32>, vector<1x8x8xf32>, vector<1x8x8xf32> -> vector<1x8x8xf32>
    "tpu.trace_stop"() : () -> ()
    %90 = vector.shape_cast %89 : vector<1x8x8xf32> to vector<8x8xf32>
    %c0_44 = arith.constant 0 : index
    %c16 = arith.constant 16 : index
    %91 = vector.load %arg15[%c0_44, %c16] : memref<8x32xf32, #tpu.memory_space<vmem>>, vector<8x8xf32>
    tpu.vector_store %arg15[%c0_44, %c16], %90 {strides = array<i32>} : memref<8x32xf32, #tpu.memory_space<vmem>>, vector<8x8xf32>,
    %92 = vector.extract_strided_slice %31 {offsets = [0, 0, 24], sizes = [1, 8, 8], strides = [1, 1, 1]} : vector<1x8x32xf32> to vector<1x8x8xf32>
    %93 = vector.extract_strided_slice %30 {offsets = [0, 0, 24], sizes = [1, 8, 8], strides = [1, 1, 1]} : vector<1x8x32xf32> to vector<1x8x8xf32>
    %94 = vector.extract_strided_slice %29 {offsets = [0, 0, 24], sizes = [1, 8, 8], strides = [1, 1, 1]} : vector<1x8x32xf32> to vector<1x8x8xf32>
    "tpu.trace_start"() <{level = 10 : i32, message = "bqd,bkd->bqk"}> : () -> ()
    %cst_45 = arith.constant dense<0.000000e+00> : vector<1x8x8xf32>
    %95 = tpu.matmul %92, %93, %cst_45 {dimension_numbers = #tpu.dot_dimension_numbers<[2], [2], [1], [1], [0, 0, 0, 1, 1, 1], [0], [0]>} : vector<1x8x8xf32>, vector<1x8x8xf32>, vector<1x8x8xf32> -> vector<1x8x8xf32>
    "tpu.trace_stop"() : () -> ()
    %96 = arith.addf %95, %37 : vector<1x8x8xf32>
    %cst_46 = arith.constant dense<0xFF800000> : vector<1x8xf32>
    %97 = vector.multi_reduction <maximumf>, %96, %cst_46 [2] : vector<1x8x8xf32> to vector<1x8xf32>
    %98 = vector.shape_cast %97 : vector<1x8xf32> to vector<1x8x1xf32>
    %99 = vector.broadcast %98 : vector<1x8x1xf32> to vector<1x8x8xf32>
    %100 = arith.subf %96, %99 : vector<1x8x8xf32>
    %101 = math.exp %100 : vector<1x8x8xf32>
    %cst_47 = arith.constant dense<0.000000e+00> : vector<1x8xf32>
    %102 = vector.multi_reduction <add>, %101, %cst_47 [2] : vector<1x8x8xf32> to vector<1x8xf32>
    %103 = vector.shape_cast %102 : vector<1x8xf32> to vector<1x8x1xf32>
    %104 = tpu.reciprocal %103 {approx = true} : vector<1x8x1xf32> -> vector<1x8x1xf32>
    %105 = vector.broadcast %104 : vector<1x8x1xf32> to vector<1x8x8xf32>
    %106 = arith.mulf %101, %105 : vector<1x8x8xf32>
    "tpu.trace_start"() <{level = 10 : i32, message = "bqk,bkd->bqd"}> : () -> ()
    %cst_48 = arith.constant dense<0.000000e+00> : vector<1x8x8xf32>
    %107 = tpu.matmul %106, %94, %cst_48 {dimension_numbers = #tpu.dot_dimension_numbers<[2], [1], [1], [2], [0, 0, 0, 1, 1, 2], [0], [0]>} : vector<1x8x8xf32>, vector<1x8x8xf32>, vector<1x8x8xf32> -> vector<1x8x8xf32>
    "tpu.trace_stop"() : () -> ()
    %108 = vector.shape_cast %107 : vector<1x8x8xf32> to vector<8x8xf32>
    %c0_49 = arith.constant 0 : index
    %c24 = arith.constant 24 : index
    %109 = vector.load %arg15[%c0_49, %c24] : memref<8x32xf32, #tpu.memory_space<vmem>>, vector<8x8xf32>
    tpu.vector_store %arg15[%c0_49, %c24], %108 {strides = array<i32>} : memref<8x32xf32, #tpu.memory_space<vmem>>, vector<8x8xf32>,
    %110 = vector.shape_cast %52 : vector<1x8x8xf32> to vector<1x1x8x8xf32>
    %111 = vector.shape_cast %70 : vector<1x8x8xf32> to vector<1x1x8x8xf32>
    %112 = vector.shape_cast %88 : vector<1x8x8xf32> to vector<1x1x8x8xf32>
    %113 = vector.shape_cast %106 : vector<1x8x8xf32> to vector<1x1x8x8xf32>
    %114 = tpu.concatenate %110, %111, %112, %113 in 1 : vector<1x1x8x8xf32>, vector<1x1x8x8xf32>, vector<1x1x8x8xf32>, vector<1x1x8x8xf32> -> vector<1x4x8x8xf32>
    %c0_50 = arith.constant 0 : index
    %c0_51 = arith.constant 0 : index
    %c0_52 = arith.constant 0 : index
    %c0_53 = arith.constant 0 : index
    %115 = vector.load %arg14[%c0_50, %c0_51, %c0_52, %c0_53] : memref<1x4x8x8xf32, #tpu.memory_space<vmem>>, vector<1x4x8x8xf32>
    tpu.vector_store %arg14[%c0_50, %c0_51, %c0_52, %c0_53], %114 {strides = array<i32>} : memref<1x4x8x8xf32, #tpu.memory_space<vmem>>, vector<1x4x8x8xf32>,
    %c0_54 = arith.constant 0 : index
    %c0_55 = arith.constant 0 : index
    %116 = vector.load %arg15[%c0_54, %c0_55] : memref<8x32xf32, #tpu.memory_space<vmem>>, vector<8x32xf32>
    %c0_56 = arith.constant 0 : index
    %c0_57 = arith.constant 0 : index
    %117 = vector.load %arg11[%c0_56, %c0_57] : memref<32x32xf32, #tpu.memory_space<vmem>>, vector<32x32xf32>
    %cst_58 = arith.constant dense<0.000000e+00> : vector<8x32xf32>
    %118 = tpu.matmul %116, %117, %cst_58 {dimension_numbers = #tpu.dot_dimension_numbers<[1], [0], [0], [1], [0, 0, 1, 1], [], []>} : vector<8x32xf32>, vector<32x32xf32>, vector<8x32xf32> -> vector<8x32xf32>
    %c0_59 = arith.constant 0 : index
    %c0_60 = arith.constant 0 : index
    %119 = vector.load %arg12[%c0_59, %c0_60] : memref<1x32xf32, #tpu.memory_space<vmem>>, vector<1x32xf32>
    %120 = vector.shape_cast %119 : vector<1x32xf32> to vector<32xf32>
    %121 = vector.shape_cast %120 : vector<32xf32> to vector<1x32xf32>
    %122 = vector.broadcast %121 : vector<1x32xf32> to vector<8x32xf32>
    %123 = arith.addf %118, %122 : vector<8x32xf32>
    %124 = vector.shape_cast %123 : vector<8x32xf32> to vector<1x8x32xf32>
    %c0_61 = arith.constant 0 : index
    %c0_62 = arith.constant 0 : index
    %c0_63 = arith.constant 0 : index
    %125 = vector.load %arg13[%c0_61, %c0_62, %c0_63] : memref<1x8x32xf32, #tpu.memory_space<vmem>>, vector<1x8x32xf32>
    tpu.vector_store %arg13[%c0_61, %c0_62, %c0_63], %124 {strides = array<i32>} : memref<1x8x32xf32, #tpu.memory_space<vmem>>, vector<1x8x32xf32>,
    return
  }
  func.func @transform_0(%arg0: i32) -> (i32, i32, i32) {
    %c0_i32 = arith.constant 0 : i32
    %c0_i32_0 = arith.constant 0 : i32
    %c0_i32_1 = arith.constant 0 : i32
    return %arg0, %c0_i32, %c0_i32_0 : i32, i32, i32
  }
  func.func @transform_1(%arg0: i32) -> (i32, i32, i32) {
    %c0_i32 = arith.constant 0 : i32
    %c0_i32_0 = arith.constant 0 : i32
    %c0_i32_1 = arith.constant 0 : i32
    return %arg0, %c0_i32, %c0_i32_0 : i32, i32, i32
  }
  func.func @transform_2(%arg0: i32) -> (i32, i32, i32) {
    %c0_i32 = arith.constant 0 : i32
    %c0_i32_0 = arith.constant 0 : i32
    %c0_i32_1 = arith.constant 0 : i32
    return %arg0, %c0_i32, %c0_i32_0 : i32, i32, i32
  }
  func.func @transform_3(%arg0: i32) -> (i32, i32, i32) {
    %c0_i32 = arith.constant 0 : i32
    %c0_i32_0 = arith.constant 0 : i32
    %c0_i32_1 = arith.constant 0 : i32
    return %arg0, %c0_i32, %c0_i32_0 : i32, i32, i32
  }
  func.func @transform_4(%arg0: i32) -> (i32, i32) {
    %c0_i32 = arith.constant 0 : i32
    %c0_i32_0 = arith.constant 0 : i32
    %c0_i32_1 = arith.constant 0 : i32
    return %c0_i32, %c0_i32_0 : i32, i32
  }
  func.func @transform_5(%arg0: i32) -> (i32, i32) {
    %c0_i32 = arith.constant 0 : i32
    %c0_i32_0 = arith.constant 0 : i32
    %c0_i32_1 = arith.constant 0 : i32
    return %c0_i32, %c0_i32_0 : i32, i32
  }
  func.func @transform_6(%arg0: i32) -> (i32, i32) {
    %c0_i32 = arith.constant 0 : i32
    %c0_i32_0 = arith.constant 0 : i32
    %c0_i32_1 = arith.constant 0 : i32
    return %c0_i32, %c0_i32_0 : i32, i32
  }
  func.func @transform_7(%arg0: i32) -> (i32, i32) {
    %c0_i32 = arith.constant 0 : i32
    %c0_i32_0 = arith.constant 0 : i32
    %c0_i32_1 = arith.constant 0 : i32
    return %c0_i32, %c0_i32_0 : i32, i32
  }
  func.func @transform_8(%arg0: i32) -> (i32, i32) {
    %c0_i32 = arith.constant 0 : i32
    %c0_i32_0 = arith.constant 0 : i32
    %c0_i32_1 = arith.constant 0 : i32
    return %c0_i32, %c0_i32_0 : i32, i32
  }
  func.func @transform_9(%arg0: i32) -> (i32, i32) {
    %c0_i32 = arith.constant 0 : i32
    %c0_i32_0 = arith.constant 0 : i32
    %c0_i32_1 = arith.constant 0 : i32
    return %c0_i32, %c0_i32_0 : i32, i32
  }
  func.func @transform_10(%arg0: i32) -> (i32, i32) {
    %c0_i32 = arith.constant 0 : i32
    %c0_i32_0 = arith.constant 0 : i32
    %c0_i32_1 = arith.constant 0 : i32
    return %c0_i32, %c0_i32_0 : i32, i32
  }
  func.func @transform_11(%arg0: i32) -> (i32, i32) {
    %c0_i32 = arith.constant 0 : i32
    %c0_i32_0 = arith.constant 0 : i32
    %c0_i32_1 = arith.constant 0 : i32
    return %c0_i32, %c0_i32_0 : i32, i32
  }
  func.func @transform_12(%arg0: i32) -> (i32, i32, i32) {
    %c0_i32 = arith.constant 0 : i32
    %c0_i32_0 = arith.constant 0 : i32
    %c0_i32_1 = arith.constant 0 : i32
    return %arg0, %c0_i32, %c0_i32_0 : i32, i32, i32
  }
  func.func @transform_13(%arg0: i32) -> (i32, i32, i32, i32) {
    %c0_i32 = arith.constant 0 : i32
    %c0_i32_0 = arith.constant 0 : i32
    %c0_i32_1 = arith.constant 0 : i32
    %c0_i32_2 = arith.constant 0 : i32
    return %arg0, %c0_i32, %c0_i32_0, %c0_i32_1 : i32, i32, i32, i32
  }
}

module attributes {stable_mosaic.version = 11 : i64} {
  func.func @_self_attention_kernel(%arg0: i32, %arg1: memref<1x8x32xf32, #tpu.memory_space<vmem>>, %arg2: memref<1x8x32xf32, #tpu.memory_space<vmem>>, %arg3: memref<1x8x32xf32, #tpu.memory_space<vmem>>, %arg4: memref<1x8x8xf32, #tpu.memory_space<vmem>>, %arg5: memref<32x32xf32, #tpu.memory_space<vmem>>, %arg6: memref<1x32xf32, #tpu.memory_space<vmem>>, %arg7: memref<32x32xf32, #tpu.memory_space<vmem>>, %arg8: memref<1x32xf32, #tpu.memory_space<vmem>>, %arg9: memref<32x32xf32, #tpu.memory_space<vmem>>, %arg10: memref<1x32xf32, #tpu.memory_space<vmem>>, %arg11: memref<32x32xf32, #tpu.memory_space<vmem>>, %arg12: memref<1x32xf32, #tpu.memory_space<vmem>>, %arg13: memref<1x8x32xf32, #tpu.memory_space<vmem>>, %arg14: memref<1x4x8x8xf32, #tpu.memory_space<vmem>>, %arg15: memref<8x32xf32, #tpu.memory_space<vmem>>) attributes {dimension_semantics = [#tpu.dimension_semantics<parallel>], iteration_bounds = array<i64: 2>, scalar_prefetch = 0 : i64, scratch_operands = 1 : i64, tpu.core_type = #tpu.core_type<tc>, window_params = [{transform_indices = @transform_0, window_bounds = array<i64: 1, 8, 32>}, {transform_indices = @transform_1, window_bounds = array<i64: 1, 8, 32>}, {transform_indices = @transform_2, window_bounds = array<i64: 1, 8, 32>}, {transform_indices = @transform_3, window_bounds = array<i64: 1, 8, 8>}, {pipeline_mode = #tpu.pipeline_mode<synchronous>, transform_indices = @transform_4, window_bounds = array<i64: 32, 32>}, {pipeline_mode = #tpu.pipeline_mode<synchronous>, transform_indices = @transform_5, window_bounds = array<i64: 1, 32>}, {pipeline_mode = #tpu.pipeline_mode<synchronous>, transform_indices = @transform_6, window_bounds = array<i64: 32, 32>}, {pipeline_mode = #tpu.pipeline_mode<synchronous>, transform_indices = @transform_7, window_bounds = array<i64: 1, 32>}, {pipeline_mode = #tpu.pipeline_mode<synchronous>, transform_indices = @transform_8, window_bounds = array<i64: 32, 32>}, {pipeline_mode = #tpu.pipeline_mode<synchronous>, transform_indices = @transform_9, window_bounds = array<i64: 1, 32>}, {pipeline_mode = #tpu.pipeline_mode<synchronous>, transform_indices = @transform_10, window_bounds = array<i64: 32, 32>}, {pipeline_mode = #tpu.pipeline_mode<synchronous>, transform_indices = @transform_11, window_bounds = array<i64: 1, 32>}, {transform_indices = @transform_12, window_bounds = array<i64: 1, 8, 32>}, {transform_indices = @transform_13, window_bounds = array<i64: 1, 4, 8, 8>}]} {
    %c0 = arith.constant 0 : index
    %c0_0 = arith.constant 0 : index
    %c0_1 = arith.constant 0 : index
    %0 = vector.load %arg1[%c0, %c0_0, %c0_1] : memref<1x8x32xf32, #tpu.memory_space<vmem>>, vector<1x8x32xf32>
    %1 = vector.shape_cast %0 : vector<1x8x32xf32> to vector<8x32xf32>
    %c0_2 = arith.constant 0 : index
    %c0_3 = arith.constant 0 : index
    %2 = vector.load %arg5[%c0_2, %c0_3] : memref<32x32xf32, #tpu.memory_space<vmem>>, vector<32x32xf32>
    %cst = arith.constant dense<0.000000e+00> : vector<8x32xf32>
    %3 = tpu.matmul %1, %2, %cst {dimension_numbers = #tpu.dot_dimension_numbers<[1], [0], [0], [1], [0, 0, 1, 1], [], []>} : vector<8x32xf32>, vector<32x32xf32>, vector<8x32xf32> -> vector<8x32xf32>
    %c0_4 = arith.constant 0 : index
    %c0_5 = arith.constant 0 : index
    %4 = vector.load %arg6[%c0_4, %c0_5] : memref<1x32xf32, #tpu.memory_space<vmem>>, vector<1x32xf32>
    %5 = vector.shape_cast %4 : vector<1x32xf32> to vector<32xf32>
    %6 = vector.shape_cast %5 : vector<32xf32> to vector<1x32xf32>
    %7 = vector.broadcast %6 : vector<1x32xf32> to vector<8x32xf32>
    %8 = arith.addf %3, %7 : vector<8x32xf32>
    %c0_6 = arith.constant 0 : index
    %c0_7 = arith.constant 0 : index
    %c0_8 = arith.constant 0 : index
    %9 = vector.load %arg2[%c0_6, %c0_7, %c0_8] : memref<1x8x32xf32, #tpu.memory_space<vmem>>, vector<1x8x32xf32>
    %10 = vector.shape_cast %9 : vector<1x8x32xf32> to vector<8x32xf32>
    %c0_9 = arith.constant 0 : index
    %c0_10 = arith.constant 0 : index
    %11 = vector.load %arg7[%c0_9, %c0_10] : memref<32x32xf32, #tpu.memory_space<vmem>>, vector<32x32xf32>
    %cst_11 = arith.constant dense<0.000000e+00> : vector<8x32xf32>
    %12 = tpu.matmul %10, %11, %cst_11 {dimension_numbers = #tpu.dot_dimension_numbers<[1], [0], [0], [1], [0, 0, 1, 1], [], []>} : vector<8x32xf32>, vector<32x32xf32>, vector<8x32xf32> -> vector<8x32xf32>
    %c0_12 = arith.constant 0 : index
    %c0_13 = arith.constant 0 : index
    %13 = vector.load %arg8[%c0_12, %c0_13] : memref<1x32xf32, #tpu.memory_space<vmem>>, vector<1x32xf32>
    %14 = vector.shape_cast %13 : vector<1x32xf32> to vector<32xf32>
    %15 = vector.shape_cast %14 : vector<32xf32> to vector<1x32xf32>
    %16 = vector.broadcast %15 : vector<1x32xf32> to vector<8x32xf32>
    %17 = arith.addf %12, %16 : vector<8x32xf32>
    %c0_14 = arith.constant 0 : index
    %c0_15 = arith.constant 0 : index
    %c0_16 = arith.constant 0 : index
    %18 = vector.load %arg3[%c0_14, %c0_15, %c0_16] : memref<1x8x32xf32, #tpu.memory_space<vmem>>, vector<1x8x32xf32>
    %19 = vector.shape_cast %18 : vector<1x8x32xf32> to vector<8x32xf32>
    %c0_17 = arith.constant 0 : index
    %c0_18 = arith.constant 0 : index
    %20 = vector.load %arg9[%c0_17, %c0_18] : memref<32x32xf32, #tpu.memory_space<vmem>>, vector<32x32xf32>
    %cst_19 = arith.constant dense<0.000000e+00> : vector<8x32xf32>
    %21 = tpu.matmul %19, %20, %cst_19 {dimension_numbers = #tpu.dot_dimension_numbers<[1], [0], [0], [1], [0, 0, 1, 1], [], []>} : vector<8x32xf32>, vector<32x32xf32>, vector<8x32xf32> -> vector<8x32xf32>
    %c0_20 = arith.constant 0 : index
    %c0_21 = arith.constant 0 : index
    %22 = vector.load %arg10[%c0_20, %c0_21] : memref<1x32xf32, #tpu.memory_space<vmem>>, vector<1x32xf32>
    %23 = vector.shape_cast %22 : vector<1x32xf32> to vector<32xf32>
    %24 = vector.shape_cast %23 : vector<32xf32> to vector<1x32xf32>
    %25 = vector.broadcast %24 : vector<1x32xf32> to vector<8x32xf32>
    %26 = arith.addf %21, %25 : vector<8x32xf32>
    %cst_22 = arith.constant 0.176776692 : f32
    %27 = vector.broadcast %cst_22 : f32 to vector<8x32xf32>
    %28 = arith.mulf %26, %27 : vector<8x32xf32>
    %29 = vector.shape_cast %8 : vector<8x32xf32> to vector<1x8x32xf32>
    %30 = vector.shape_cast %17 : vector<8x32xf32> to vector<1x8x32xf32>
    %31 = vector.shape_cast %28 : vector<8x32xf32> to vector<1x8x32xf32>
    %c0_23 = arith.constant 0 : index
    %c0_24 = arith.constant 0 : index
    %c0_25 = arith.constant 0 : index
    %32 = vector.load %arg4[%c0_23, %c0_24, %c0_25] : memref<1x8x8xf32, #tpu.memory_space<vmem>>, vector<1x8x8xf32>
    %cst_26 = arith.constant 0.000000e+00 : f32
    %33 = vector.broadcast %cst_26 : f32 to vector<1x8x8xf32>
    %34 = arith.cmpf oeq, %32, %33 : vector<1x8x8xf32>
    %cst_27 = arith.constant -1.000000e+20 : f32
    %cst_28 = arith.constant 0.000000e+00 : f32
    %35 = vector.broadcast %cst_27 : f32 to vector<1x8x8xf32>
    %36 = vector.broadcast %cst_28 : f32 to vector<1x8x8xf32>
    %37 = arith.select %34, %35, %36 : vector<1x8x8xi1>, vector<1x8x8xf32>
    %38 = vector.extract_strided_slice %31 {offsets = [0, 0, 0], sizes = [1, 8, 8], strides = [1, 1, 1]} : vector<1x8x32xf32> to vector<1x8x8xf32>
    %39 = vector.extract_strided_slice %30 {offsets = [0, 0, 0], sizes = [1, 8, 8], strides = [1, 1, 1]} : vector<1x8x32xf32> to vector<1x8x8xf32>
    %40 = vector.extract_strided_slice %29 {offsets = [0, 0, 0], sizes = [1, 8, 8], strides = [1, 1, 1]} : vector<1x8x32xf32> to vector<1x8x8xf32>
    "tpu.trace_start"() <{level = 10 : i32, message = "bqd,bkd->bqk"}> : () -> ()
    %cst_29 = arith.constant dense<0.000000e+00> : vector<1x8x8xf32>
    %41 = tpu.matmul %38, %39, %cst_29 {dimension_numbers = #tpu.dot_dimension_numbers<[2], [2], [1], [1], [0, 0, 0, 1, 1, 1], [0], [0]>} : vector<1x8x8xf32>, vector<1x8x8xf32>, vector<1x8x8xf32> -> vector<1x8x8xf32>
    "tpu.trace_stop"() : () -> ()
    %42 = arith.addf %41, %37 : vector<1x8x8xf32>
    %cst_30 = arith.constant dense<0xFF800000> : vector<1x8xf32>
    %43 = vector.multi_reduction <maximumf>, %42, %cst_30 [2] : vector<1x8x8xf32> to vector<1x8xf32>
    %44 = vector.shape_cast %43 : vector<1x8xf32> to vector<1x8x1xf32>
    %45 = vector.broadcast %44 : vector<1x8x1xf32> to vector<1x8x8xf32>
    %46 = arith.subf %42, %45 : vector<1x8x8xf32>
    %47 = math.exp %46 : vector<1x8x8xf32>
    %cst_31 = arith.constant dense<0.000000e+00> : vector<1x8xf32>
    %48 = vector.multi_reduction <add>, %47, %cst_31 [2] : vector<1x8x8xf32> to vector<1x8xf32>
    %49 = vector.shape_cast %48 : vector<1x8xf32> to vector<1x8x1xf32>
    %50 = tpu.reciprocal %49 {approx = true} : vector<1x8x1xf32> -> vector<1x8x1xf32>
    %51 = vector.broadcast %50 : vector<1x8x1xf32> to vector<1x8x8xf32>
    %52 = arith.mulf %47, %51 : vector<1x8x8xf32>
    "tpu.trace_start"() <{level = 10 : i32, message = "bqk,bkd->bqd"}> : () -> ()
    %cst_32 = arith.constant dense<0.000000e+00> : vector<1x8x8xf32>
    %53 = tpu.matmul %52, %40, %cst_32 {dimension_numbers = #tpu.dot_dimension_numbers<[2], [1], [1], [2], [0, 0, 0, 1, 1, 2], [0], [0]>} : vector<1x8x8xf32>, vector<1x8x8xf32>, vector<1x8x8xf32> -> vector<1x8x8xf32>
    "tpu.trace_stop"() : () -> ()
    %54 = vector.shape_cast %53 : vector<1x8x8xf32> to vector<8x8xf32>
    %c0_33 = arith.constant 0 : index
    %c0_34 = arith.constant 0 : index
    %55 = vector.load %arg15[%c0_33, %c0_34] : memref<8x32xf32, #tpu.memory_space<vmem>>, vector<8x8xf32>
    tpu.vector_store %arg15[%c0_33, %c0_34], %54 {strides = array<i32>} : memref<8x32xf32, #tpu.memory_space<vmem>>, vector<8x8xf32>,
    %56 = vector.extract_strided_slice %31 {offsets = [0, 0, 8], sizes = [1, 8, 8], strides = [1, 1, 1]} : vector<1x8x32xf32> to vector<1x8x8xf32>
    %57 = vector.extract_strided_slice %30 {offsets = [0, 0, 8], sizes = [1, 8, 8], strides = [1, 1, 1]} : vector<1x8x32xf32> to vector<1x8x8xf32>
    %58 = vector.extract_strided_slice %29 {offsets = [0, 0, 8], sizes = [1, 8, 8], strides = [1, 1, 1]} : vector<1x8x32xf32> to vector<1x8x8xf32>
    "tpu.trace_start"() <{level = 10 : i32, message = "bqd,bkd->bqk"}> : () -> ()
    %cst_35 = arith.constant dense<0.000000e+00> : vector<1x8x8xf32>
    %59 = tpu.matmul %56, %57, %cst_35 {dimension_numbers = #tpu.dot_dimension_numbers<[2], [2], [1], [1], [0, 0, 0, 1, 1, 1], [0], [0]>} : vector<1x8x8xf32>, vector<1x8x8xf32>, vector<1x8x8xf32> -> vector<1x8x8xf32>
    "tpu.trace_stop"() : () -> ()
    %60 = arith.addf %59, %37 : vector<1x8x8xf32>
    %cst_36 = arith.constant dense<0xFF800000> : vector<1x8xf32>
    %61 = vector.multi_reduction <maximumf>, %60, %cst_36 [2] : vector<1x8x8xf32> to vector<1x8xf32>
    %62 = vector.shape_cast %61 : vector<1x8xf32> to vector<1x8x1xf32>
    %63 = vector.broadcast %62 : vector<1x8x1xf32> to vector<1x8x8xf32>
    %64 = arith.subf %60, %63 : vector<1x8x8xf32>
    %65 = math.exp %64 : vector<1x8x8xf32>
    %cst_37 = arith.constant dense<0.000000e+00> : vector<1x8xf32>
    %66 = vector.multi_reduction <add>, %65, %cst_37 [2] : vector<1x8x8xf32> to vector<1x8xf32>
    %67 = vector.shape_cast %66 : vector<1x8xf32> to vector<1x8x1xf32>
    %68 = tpu.reciprocal %67 {approx = true} : vector<1x8x1xf32> -> vector<1x8x1xf32>
    %69 = vector.broadcast %68 : vector<1x8x1xf32> to vector<1x8x8xf32>
    %70 = arith.mulf %65, %69 : vector<1x8x8xf32>
    "tpu.trace_start"() <{level = 10 : i32, message = "bqk,bkd->bqd"}> : () -> ()
    %cst_38 = arith.constant dense<0.000000e+00> : vector<1x8x8xf32>
    %71 = tpu.matmul %70, %58, %cst_38 {dimension_numbers = #tpu.dot_dimension_numbers<[2], [1], [1], [2], [0, 0, 0, 1, 1, 2], [0], [0]>} : vector<1x8x8xf32>, vector<1x8x8xf32>, vector<1x8x8xf32> -> vector<1x8x8xf32>
    "tpu.trace_stop"() : () -> ()
    %72 = vector.shape_cast %71 : vector<1x8x8xf32> to vector<8x8xf32>
    %c0_39 = arith.constant 0 : index
    %c8 = arith.constant 8 : index
    %73 = vector.load %arg15[%c0_39, %c8] : memref<8x32xf32, #tpu.memory_space<vmem>>, vector<8x8xf32>
    tpu.vector_store %arg15[%c0_39, %c8], %72 {strides = array<i32>} : memref<8x32xf32, #tpu.memory_space<vmem>>, vector<8x8xf32>,
    %74 = vector.extract_strided_slice %31 {offsets = [0, 0, 16], sizes = [1, 8, 8], strides = [1, 1, 1]} : vector<1x8x32xf32> to vector<1x8x8xf32>
    %75 = vector.extract_strided_slice %30 {offsets = [0, 0, 16], sizes = [1, 8, 8], strides = [1, 1, 1]} : vector<1x8x32xf32> to vector<1x8x8xf32>
    %76 = vector.extract_strided_slice %29 {offsets = [0, 0, 16], sizes = [1, 8, 8], strides = [1, 1, 1]} : vector<1x8x32xf32> to vector<1x8x8xf32>
    "tpu.trace_start"() <{level = 10 : i32, message = "bqd,bkd->bqk"}> : () -> ()
    %cst_40 = arith.constant dense<0.000000e+00> : vector<1x8x8xf32>
    %77 = tpu.matmul %74, %75, %cst_40 {dimension_numbers = #tpu.dot_dimension_numbers<[2], [2], [1], [1], [0, 0, 0, 1, 1, 1], [0], [0]>} : vector<1x8x8xf32>, vector<1x8x8xf32>, vector<1x8x8xf32> -> vector<1x8x8xf32>
    "tpu.trace_stop"() : () -> ()
    %78 = arith.addf %77, %37 : vector<1x8x8xf32>
    %cst_41 = arith.constant dense<0xFF800000> : vector<1x8xf32>
    %79 = vector.multi_reduction <maximumf>, %78, %cst_41 [2] : vector<1x8x8xf32> to vector<1x8xf32>
    %80 = vector.shape_cast %79 : vector<1x8xf32> to vector<1x8x1xf32>
    %81 = vector.broadcast %80 : vector<1x8x1xf32> to vector<1x8x8xf32>
    %82 = arith.subf %78, %81 : vector<1x8x8xf32>
    %83 = math.exp %82 : vector<1x8x8xf32>
    %cst_42 = arith.constant dense<0.000000e+00> : vector<1x8xf32>
    %84 = vector.multi_reduction <add>, %83, %cst_42 [2] : vector<1x8x8xf32> to vector<1x8xf32>
    %85 = vector.shape_cast %84 : vector<1x8xf32> to vector<1x8x1xf32>
    %86 = tpu.reciprocal %85 {approx = true} : vector<1x8x1xf32> -> vector<1x8x1xf32>
    %87 = vector.broadcast %86 : vector<1x8x1xf32> to vector<1x8x8xf32>
    %88 = arith.mulf %83, %87 : vector<1x8x8xf32>
    "tpu.trace_start"() <{level = 10 : i32, message = "bqk,bkd->bqd"}> : () -> ()
    %cst_43 = arith.constant dense<0.000000e+00> : vector<1x8x8xf32>
    %89 = tpu.matmul %88, %76, %cst_43 {dimension_numbers = #tpu.dot_dimension_numbers<[2], [1], [1], [2], [0, 0, 0, 1, 1, 2], [0], [0]>} : vector<1x8x8xf32>, vector<1x8x8xf32>, vector<1x8x8xf32> -> vector<1x8x8xf32>
    "tpu.trace_stop"() : () -> ()
    %90 = vector.shape_cast %89 : vector<1x8x8xf32> to vector<8x8xf32>
    %c0_44 = arith.constant 0 : index
    %c16 = arith.constant 16 : index
    %91 = vector.load %arg15[%c0_44, %c16] : memref<8x32xf32, #tpu.memory_space<vmem>>, vector<8x8xf32>
    tpu.vector_store %arg15[%c0_44, %c16], %90 {strides = array<i32>} : memref<8x32xf32, #tpu.memory_space<vmem>>, vector<8x8xf32>,
    %92 = vector.extract_strided_slice %31 {offsets = [0, 0, 24], sizes = [1, 8, 8], strides = [1, 1, 1]} : vector<1x8x32xf32> to vector<1x8x8xf32>
    %93 = vector.extract_strided_slice %30 {offsets = [0, 0, 24], sizes = [1, 8, 8], strides = [1, 1, 1]} : vector<1x8x32xf32> to vector<1x8x8xf32>
    %94 = vector.extract_strided_slice %29 {offsets = [0, 0, 24], sizes = [1, 8, 8], strides = [1, 1, 1]} : vector<1x8x32xf32> to vector<1x8x8xf32>
    "tpu.trace_start"() <{level = 10 : i32, message = "bqd,bkd->bqk"}> : () -> ()
    %cst_45 = arith.constant dense<0.000000e+00> : vector<1x8x8xf32>
    %95 = tpu.matmul %92, %93, %cst_45 {dimension_numbers = #tpu.dot_dimension_numbers<[2], [2], [1], [1], [0, 0, 0, 1, 1, 1], [0], [0]>} : vector<1x8x8xf32>, vector<1x8x8xf32>, vector<1x8x8xf32> -> vector<1x8x8xf32>
    "tpu.trace_stop"() : () -> ()
    %96 = arith.addf %95, %37 : vector<1x8x8xf32>
    %cst_46 = arith.constant dense<0xFF800000> : vector<1x8xf32>
    %97 = vector.multi_reduction <maximumf>, %96, %cst_46 [2] : vector<1x8x8xf32> to vector<1x8xf32>
    %98 = vector.shape_cast %97 : vector<1x8xf32> to vector<1x8x1xf32>
    %99 = vector.broadcast %98 : vector<1x8x1xf32> to vector<1x8x8xf32>
    %100 = arith.subf %96, %99 : vector<1x8x8xf32>
    %101 = math.exp %100 : vector<1x8x8xf32>
    %cst_47 = arith.constant dense<0.000000e+00> : vector<1x8xf32>
    %102 = vector.multi_reduction <add>, %101, %cst_47 [2] : vector<1x8x8xf32> to vector<1x8xf32>
    %103 = vector.shape_cast %102 : vector<1x8xf32> to vector<1x8x1xf32>
    %104 = tpu.reciprocal %103 {approx = true} : vector<1x8x1xf32> -> vector<1x8x1xf32>
    %105 = vector.broadcast %104 : vector<1x8x1xf32> to vector<1x8x8xf32>
    %106 = arith.mulf %101, %105 : vector<1x8x8xf32>
    "tpu.trace_start"() <{level = 10 : i32, message = "bqk,bkd->bqd"}> : () -> ()
    %cst_48 = arith.constant dense<0.000000e+00> : vector<1x8x8xf32>
    %107 = tpu.matmul %106, %94, %cst_48 {dimension_numbers = #tpu.dot_dimension_numbers<[2], [1], [1], [2], [0, 0, 0, 1, 1, 2], [0], [0]>} : vector<1x8x8xf32>, vector<1x8x8xf32>, vector<1x8x8xf32> -> vector<1x8x8xf32>
    "tpu.trace_stop"() : () -> ()
    %108 = vector.shape_cast %107 : vector<1x8x8xf32> to vector<8x8xf32>
    %c0_49 = arith.constant 0 : index
    %c24 = arith.constant 24 : index
    %109 = vector.load %arg15[%c0_49, %c24] : memref<8x32xf32, #tpu.memory_space<vmem>>, vector<8x8xf32>
    tpu.vector_store %arg15[%c0_49, %c24], %108 {strides = array<i32>} : memref<8x32xf32, #tpu.memory_space<vmem>>, vector<8x8xf32>,
    %110 = vector.shape_cast %52 : vector<1x8x8xf32> to vector<1x1x8x8xf32>
    %111 = vector.shape_cast %70 : vector<1x8x8xf32> to vector<1x1x8x8xf32>
    %112 = vector.shape_cast %88 : vector<1x8x8xf32> to vector<1x1x8x8xf32>
    %113 = vector.shape_cast %106 : vector<1x8x8xf32> to vector<1x1x8x8xf32>
    %114 = tpu.concatenate %110, %111, %112, %113 in 1 : vector<1x1x8x8xf32>, vector<1x1x8x8xf32>, vector<1x1x8x8xf32>, vector<1x1x8x8xf32> -> vector<1x4x8x8xf32>
    %c0_50 = arith.constant 0 : index
    %c0_51 = arith.constant 0 : index
    %c0_52 = arith.constant 0 : index
    %c0_53 = arith.constant 0 : index
    %115 = vector.load %arg14[%c0_50, %c0_51, %c0_52, %c0_53] : memref<1x4x8x8xf32, #tpu.memory_space<vmem>>, vector<1x4x8x8xf32>
    tpu.vector_store %arg14[%c0_50, %c0_51, %c0_52, %c0_53], %114 {strides = array<i32>} : memref<1x4x8x8xf32, #tpu.memory_space<vmem>>, vector<1x4x8x8xf32>,
    %c0_54 = arith.constant 0 : index
    %c0_55 = arith.constant 0 : index
    %116 = vector.load %arg15[%c0_54, %c0_55] : memref<8x32xf32, #tpu.memory_space<vmem>>, vector<8x32xf32>
    %c0_56 = arith.constant 0 : index
    %c0_57 = arith.constant 0 : index
    %117 = vector.load %arg11[%c0_56, %c0_57] : memref<32x32xf32, #tpu.memory_space<vmem>>, vector<32x32xf32>
    %cst_58 = arith.constant dense<0.000000e+00> : vector<8x32xf32>
    %118 = tpu.matmul %116, %117, %cst_58 {dimension_numbers = #tpu.dot_dimension_numbers<[1], [0], [0], [1], [0, 0, 1, 1], [], []>} : vector<8x32xf32>, vector<32x32xf32>, vector<8x32xf32> -> vector<8x32xf32>
    %c0_59 = arith.constant 0 : index
    %c0_60 = arith.constant 0 : index
    %119 = vector.load %arg12[%c0_59, %c0_60] : memref<1x32xf32, #tpu.memory_space<vmem>>, vector<1x32xf32>
    %120 = vector.shape_cast %119 : vector<1x32xf32> to vector<32xf32>
    %121 = vector.shape_cast %120 : vector<32xf32> to vector<1x32xf32>
    %122 = vector.broadcast %121 : vector<1x32xf32> to vector<8x32xf32>
    %123 = arith.addf %118, %122 : vector<8x32xf32>
    %124 = vector.shape_cast %123 : vector<8x32xf32> to vector<1x8x32xf32>
    %c0_61 = arith.constant 0 : index
    %c0_62 = arith.constant 0 : index
    %c0_63 = arith.constant 0 : index
    %125 = vector.load %arg13[%c0_61, %c0_62, %c0_63] : memref<1x8x32xf32, #tpu.memory_space<vmem>>, vector<1x8x32xf32>
    tpu.vector_store %arg13[%c0_61, %c0_62, %c0_63], %124 {strides = array<i32>} : memref<1x8x32xf32, #tpu.memory_space<vmem>>, vector<1x8x32xf32>,
    return
  }
  func.func @transform_0(%arg0: i32) -> (i32, i32, i32) {
    %c0_i32 = arith.constant 0 : i32
    %c0_i32_0 = arith.constant 0 : i32
    %c0_i32_1 = arith.constant 0 : i32
    return %arg0, %c0_i32, %c0_i32_0 : i32, i32, i32
  }
  func.func @transform_1(%arg0: i32) -> (i32, i32, i32) {
    %c0_i32 = arith.constant 0 : i32
    %c0_i32_0 = arith.constant 0 : i32
    %c0_i32_1 = arith.constant 0 : i32
    return %arg0, %c0_i32, %c0_i32_0 : i32, i32, i32
  }
  func.func @transform_2(%arg0: i32) -> (i32, i32, i32) {
    %c0_i32 = arith.constant 0 : i32
    %c0_i32_0 = arith.constant 0 : i32
    %c0_i32_1 = arith.constant 0 : i32
    return %arg0, %c0_i32, %c0_i32_0 : i32, i32, i32
  }
  func.func @transform_3(%arg0: i32) -> (i32, i32, i32) {
    %c0_i32 = arith.constant 0 : i32
    %c0_i32_0 = arith.constant 0 : i32
    %c0_i32_1 = arith.constant 0 : i32
    return %arg0, %c0_i32, %c0_i32_0 : i32, i32, i32
  }
  func.func @transform_4(%arg0: i32) -> (i32, i32) {
    %c0_i32 = arith.constant 0 : i32
    %c0_i32_0 = arith.constant 0 : i32
    %c0_i32_1 = arith.constant 0 : i32
    return %c0_i32, %c0_i32_0 : i32, i32
  }
  func.func @transform_5(%arg0: i32) -> (i32, i32) {
    %c0_i32 = arith.constant 0 : i32
    %c0_i32_0 = arith.constant 0 : i32
    %c0_i32_1 = arith.constant 0 : i32
    return %c0_i32, %c0_i32_0 : i32, i32
  }
  func.func @transform_6(%arg0: i32) -> (i32, i32) {
    %c0_i32 = arith.constant 0 : i32
    %c0_i32_0 = arith.constant 0 : i32
    %c0_i32_1 = arith.constant 0 : i32
    return %c0_i32, %c0_i32_0 : i32, i32
  }
  func.func @transform_7(%arg0: i32) -> (i32, i32) {
    %c0_i32 = arith.constant 0 : i32
    %c0_i32_0 = arith.constant 0 : i32
    %c0_i32_1 = arith.constant 0 : i32
    return %c0_i32, %c0_i32_0 : i32, i32
  }
  func.func @transform_8(%arg0: i32) -> (i32, i32) {
    %c0_i32 = arith.constant 0 : i32
    %c0_i32_0 = arith.constant 0 : i32
    %c0_i32_1 = arith.constant 0 : i32
    return %c0_i32, %c0_i32_0 : i32, i32
  }
  func.func @transform_9(%arg0: i32) -> (i32, i32) {
    %c0_i32 = arith.constant 0 : i32
    %c0_i32_0 = arith.constant 0 : i32
    %c0_i32_1 = arith.constant 0 : i32
    return %c0_i32, %c0_i32_0 : i32, i32
  }
  func.func @transform_10(%arg0: i32) -> (i32, i32) {
    %c0_i32 = arith.constant 0 : i32
    %c0_i32_0 = arith.constant 0 : i32
    %c0_i32_1 = arith.constant 0 : i32
    return %c0_i32, %c0_i32_0 : i32, i32
  }
  func.func @transform_11(%arg0: i32) -> (i32, i32) {
    %c0_i32 = arith.constant 0 : i32
    %c0_i32_0 = arith.constant 0 : i32
    %c0_i32_1 = arith.constant 0 : i32
    return %c0_i32, %c0_i32_0 : i32, i32
  }
  func.func @transform_12(%arg0: i32) -> (i32, i32, i32) {
    %c0_i32 = arith.constant 0 : i32
    %c0_i32_0 = arith.constant 0 : i32
    %c0_i32_1 = arith.constant 0 : i32
    return %arg0, %c0_i32, %c0_i32_0 : i32, i32, i32
  }
  func.func @transform_13(%arg0: i32) -> (i32, i32, i32, i32) {
    %c0_i32 = arith.constant 0 : i32
    %c0_i32_0 = arith.constant 0 : i32
    %c0_i32_1 = arith.constant 0 : i32
    %c0_i32_2 = arith.constant 0 : i32
    return %arg0, %c0_i32, %c0_i32_0, %c0_i32_1 : i32, i32, i32, i32
  }
}

</mosaic_0001>

<bundles_post_ra>
// kernel: tpu_custom_call.1
= control target key start
LH: loop header
LB: loop body
LE: loop exit
PB: predicated region body
PF: predicated region fallthrough
CT: control target
= control target key end

     0   :  { %s3105_s0 = inlined_call_operand.hbm [shape: f32[2,8,32], index: 0, kind: input, shape index: {}]   ;;  %s3106_s1 = inlined_call_operand.hbm [shape: f32[2,8,32], index: 1, kind: input, shape index: {}]   ;;  %s3107_s2 = inlined_call_operand.hbm [shape: f32[2,8,32], index: 2, kind: input, shape index: {}]   ;;  %s3108_s3 = inlined_call_operand.hbm [shape: f32[2,8,8], index: 3, kind: input, shape index: {}]   ;;  %s3109_s4 = inlined_call_operand.hbm [shape: f32[32,32], index: 4, kind: input, shape index: {}]   ;;  %s3110_s5 = inlined_call_operand.vmem [shape: f32[1,32], index: 5, kind: input, shape index: {}]   ;;  %s3111_s6 = inlined_call_operand.hbm [shape: f32[32,32], index: 6, kind: input, shape index: {}]   ;;  %s3112_s7 = inlined_call_operand.vmem [shape: f32[1,32], index: 7, kind: input, shape index: {}]   ;;  %s3113_s8 = inlined_call_operand.hbm [shape: f32[32,32], index: 8, kind: input, shape index: {}]   ;;  %s3114_s9 = inlined_call_operand.vmem [shape: f32[1,32], index: 9, kind: input, shape index: {}]   ;;  %s3115_s10 = inlined_call_operand.hbm [shape: f32[32,32], index: 10, kind: input, shape index: {}]   ;;  %s3116_s11 = inlined_call_operand.vmem [shape: f32[1,32], index: 11, kind: input, shape index: {}]   ;;  %s3117_s12 = inlined_call_operand.hbm [shape: f32[2,8,32], index: 12, kind: output, shape index: {0}]   ;;  %s3118_s13 = inlined_call_operand.hbm [shape: f32[2,4,8,8], index: 13, kind: output, shape index: {1}]  }
   0x1   :  { %3140 = sst [smem:[#allocation33_spill]] %s3105_s0 }
   0x2   :  { %3141 = sst [smem:[#allocation34_spill]] %s3106_s1 }
   0x3   :  { %3142 = sst [smem:[#allocation35_spill]] %s3109_s4 }
   0x4   :  { %3143 = sst [smem:[#allocation36_spill]] %s3110_s5 }
   0x5   :  { %3144 = sst [smem:[#allocation37_spill]] %s3111_s6 }
   0x6   :  { %3145 = sst [smem:[#allocation38_spill]] %s3114_s9 }
   0x7   :  { %3146 = sst [smem:[#allocation39_spill]] %s3116_s11 }
   0x8   :  { %3147 = sst [smem:[#allocation40_spill]] %s3117_s12 }
   0x9   :  { %3148 = sst [smem:[#allocation41_spill]] %s3118_s13 }
   0xa   :  { %19 = vsyncpa [#allocation4], 0 }
   0xb   :  { %21 = vsyncpa [#allocation4 + $0x1], 0 }
   0xc   :  { %22 = vsyncpa [#allocation7], 0 }
   0xd   :  { %24 = vsyncpa [#allocation7 + $0x1], 0 }
   0xe   :  { %25 = vsyncpa [#allocation10], 0 }
   0xf   :  { %27 = vsyncpa [#allocation10 + $0x1], 0 }
  0x10   :  { %28 = vsyncpa [#allocation13], 0 }
  0x11   :  { %29 = vsyncpa [#allocation16], 0 }
  0x12   :  { %30 = vsyncpa [#allocation5], 0 }
  0x13   :  { %32 = vsyncpa [#allocation5 + $0x1], 0 }
  0x14   :  { %33 = vsyncpa [#allocation19], 0 }
  0x15   :  { %35 = vsyncpa [#allocation19 + $0x1], 0  ;;  %s2631_s25 = smov 0   ;;  %s2633_s26 = smov 0  }
  0x16   :  { %s2635_s27 = smov 0   ;;  %s2637_s28 = smov 0  }
  0x17 LB: > { %3149 = sst [smem:[#allocation28_spill]] %s2526_s25  ;;  %s2652_s29 = sadd.s32 4294967295, %s2538_s28   ;;  %s2538_s28 = sphi %s2637_s28, %s3191_s28   ;;  %s2534_s27 = sphi %s2635_s27, %s3195_s27   ;;  %s2530_s26 = sphi %s2633_s26, %s3194_s26   ;;  %s2526_s25 = sphi %s2631_s25, %s3193_s25  }
  0x18   : > { %s1900_s30 = sadd.s32 4294967294, %s2538_s28   ;;  %p61_p0 = scmp.ne.s32.totalorder %s2530_s26, %s2526_s25 }
  0x19   : > { %p3130_p1 = scmp.eq.s32.totalorder %s2652_s29, 0  ;;  %p331_p2 = scmp.eq.s32.totalorder %s2652_s29, 1 }
  0x1a   : > { %p337_p3 = scmp.eq.s32.totalorder %s1900_s30, 1  ;;  %p1901_p5 = scmp.ge.s32.totalorder %s2538_s28, 1 }
  0x1b   : > { %p2661_p4 = por %p3130_p1, %p61_p0  ;;  %p370_p7 = scmp.lt.s32.totalorder %s2538_s28, 3 }
  0x1c   : > { %p2666_p6 = por %p337_p3, %p61_p0  ;;  %s2540_s17 = smov [#allocation11]  }
  0x1d   : > { %s3150_s14 = scalar_select %p2661_p4, 1, 0 }
  0x1e   : > { %s3151_s15 = scalar_select %p2666_p6, 1, 0 }
  0x1f   : > { %p2671_p8 = pnand %p1901_p5, %p370_p7  ;;  %s382_s18 = sshll.u32 %s2540_s17, 4  ;;  %s383_s18 = int_to_ptr.vmem [resolvable:$true] %s382_s18 }
  0x20   : > { %3152 = sst [smem:[#allocation29_spill]] %s3151_s15  ;;  %s2541_s20 = smov [#allocation12]  }
  0x21   : > { %s3153_s16 = scalar_select %p2671_p8, 1, 0 }
  0x22   : > { %p2102_p9 = pneg %p2671_p8  ;;  %s398_s21 = sshll.u32 %s2541_s20, 4  ;;  %s399_s21 = int_to_ptr.vmem [resolvable:$true] %s398_s21 }
  0x23   : > { %s2219_s22 = scalar_lea.vmem %s383_s18, 512  ;;  %p2227_p5 = scmp.lt.s32.totalorder %s383_s18, %s383_s18 }
  0x24   : > { %p2680_p11 = pnand %p2102_p9, %p3130_p1  ;;  %p2220_p13 = scmp.ne.s32.totalorder %s383_s18, %s2219_s22 }
  0x25   : > { %p2228_p7 = scmp.lt.s32.totalorder %s2219_s22, %s2219_s22 }
  0x26   : > { %s3154_s19 = scalar_select %p2680_p11, 1, 0 }
  0x27   : > { %p3131_p12 = pneg %p2680_p11  ;;  %p2229_p10 = por %p2228_p7, %p2227_p5 }
  0x29   : > { %p2222_p0 = pnand %p2220_p13, %p3131_p12 }
  0x2b   : > { %p2223_p3 = pneg %p2222_p0 }
  0x2d   : > { %p2230_p9 = pnand %p2229_p10, %p2223_p3 }
  0x2f   : > { %2233 = shalt.err (!%p2230_p9)
}
  0x30   : > { %s3120_s23 = smov 128   ;;  %s3122_s24 = smov 8  }
  0x31   : > { %s3155_s4 = sld [smem:[#allocation35_spill]]  ;;  %s2245_s20 = scalar_lea.vmem %s399_s21, 512 }
  0x32   : > { %p2246_p13 = scmp.ne.s32.totalorder %s399_s21, %s2245_s20  ;;  %p2253_p10 = scmp.lt.s32.totalorder %s399_s21, %s399_s21 }
  0x33   : > { %p2254_p3 = scmp.lt.s32.totalorder %s2245_s20, %s2245_s20 }
  0x34   : > { %p2248_p0 = pnand %p2246_p13, %p3131_p12 }
  0x35   : > { %p2255_p7 = por %p2254_p3, %p2253_p10 }
  0x36   : > { %p2249_p5 = pneg %p2248_p0 }
  0x37   : > { %2105 = dma.hbm_to_vmem [thread:$0]  (!%p2680_p11), %s3155_s4, 512, %s383_s18, [#allocation10], %s3120_s23, %s3120_s23, %s3122_s24  }
  0x38   : > { %p2256_p9 = pnand %p2255_p7, %p2249_p5 }
  0x3a   : > { %2259 = shalt.err (!%p2256_p9)
}
  0x3b   : > { %s3156_s6 = sld [smem:[#allocation37_spill]]  ;;  %s2709_s18 = sadd.s32 1, %s2538_s28  }
  0x3c   : > { %3157 = sst [smem:[#allocation30_spill]] %s2709_s18  ;;  %s48_s30 = sadd.s32 1, %s2534_s27 }
  0x3d   : > { %s45_s17 = ssub.s32 %s2538_s28, %s2709_s18  ;;  %p55_p13 = scmp.ne.s32.totalorder %s2534_s27, %s2530_s26 }
  0x3e   : > { %p46_p0 = scmp.eq.s32.totalorder %s45_s17, 0  ;;  %p56_p5 = scmp.eq.s32.totalorder %s2538_s28, 0 }
  0x3f   : > { %p2719_p10 = por %p331_p2, %p55_p13  ;;  %p2139_p3 = scmp.lt.s32.totalorder %s2538_s28, 2 }
  0x40   : > { %s2725_s20 = scalar_select %p46_p0, %s2534_s27, %s48_s30  }
  0x41   : > { %2108 = dma.hbm_to_vmem [thread:$0]  (!%p2680_p11), %s3156_s6, 512, %s399_s21, [#allocation13], %s3120_s23, %s3120_s23, %s3122_s24  }
  0x42   : > { %s3158_s15 = scalar_select %p2719_p10, 1, 0 }
  0x43   : > { %3160 = sst [smem:[#allocation32_spill]] %s2725_s20  ;;  %p57_p7 = por %p56_p5, %p55_p13 }
  0x44   : > { %3159 = sst [smem:[#allocation31_spill]] %s3158_s15  ;;  %s3124_s22 = sand.u32 1, %s2534_s27  }
  0x45   : > { %s2730_s21 = sshll.u32 %s3124_s22, 3  ;;  %s2733_s23 = sshll.u32 %s2538_s28, 7 }
  0x46   : > { %p2735_p9 = pnand %p2139_p3, %p57_p7  ;;  %s3132_s24 = sand.u32 1, %s2538_s28  }
  0x47   : > { %s3162_s1 = sld [smem:[#allocation34_spill]]  ;;  %s469_s22 = scalar_lea.vmem [#allocation6], %s2730_s21 }
  0x48   : > { %s476_s20 = sshll.u32 %s469_s22, 4  ;;  %s2749_s18 = scalar_lea.sflag [#allocation7], %s3132_s24  ;;  %s477_s20 = int_to_ptr.vmem [resolvable:$true] %s476_s20 }
  0x49   : > { %p2755_p13 = pneg %p2735_p9 }
  0x4d   : > { %s2744_s30 = scalar_lea.hbm %s3162_s1, %s2733_s23  ;;  %s2265_s11 = scalar_lea.hbm %s3162_s1, 256 }
  0x4e   : > { %s2260_s25 = scalar_lea.hbm %s2744_s30, 128  ;;  %p2266_p3 = scmp.lt.s32.totalorder %s2744_s30, %s3162_s1 }
  0x4f   : > { %p2261_p2 = scmp.ne.s32.totalorder %s2744_s30, %s2260_s25  ;;  %p2267_p7 = scmp.lt.s32.totalorder %s2265_s11, %s2260_s25 }
  0x51   : > { %p2263_p0 = pnand %p2755_p13, %p2261_p2  ;;  %p2268_p1 = por %p2267_p7, %p2266_p3 }
  0x53   : > { %p2264_p5 = pneg %p2263_p0 }
  0x55   : > { %p2269_p12 = pnand %p2268_p1, %p2264_p5 }
  0x57   : > { %2272 = shalt.err (!%p2269_p12)
}
  0x58   : > { %s2273_s24 = scalar_lea.vmem %s477_s20, 128  ;;  %s2544_s15 = smov [#allocation6]  }
  0x59   : > { %p2274_p6 = scmp.ne.s32.totalorder %s477_s20, %s2273_s24  ;;  %s2278_s5 = sshll.u32 %s2544_s15, 4  ;;  %s2279_s5 = int_to_ptr.vmem [resolvable:$false] %s2278_s5 }
  0x5a   : > { %s2280_s9 = scalar_lea.vmem %s2279_s5, 256  ;;  %p2281_p2 = scmp.lt.s32.totalorder %s477_s20, %s2279_s5 }
  0x5b   : > { %p2276_p10 = pnand %p2274_p6, %p2755_p13  ;;  %p2282_p0 = scmp.lt.s32.totalorder %s2280_s9, %s2273_s24 }
  0x5d   : > { %p2277_p4 = pneg %p2276_p10  ;;  %p2283_p8 = por %p2282_p0, %p2281_p2 }
  0x5f   : > { %p2284_p11 = pnand %p2283_p8, %p2277_p4 }
  0x61   : > { %2287 = shalt.err (!%p2284_p11)
}
  0x62   : > { %2121 = dma.hbm_to_vmem [thread:$0]  (!%p2735_p9), %s2744_s30, 128, %s477_s20, %s2749_s18  }
  0x63   : > { %s2545_s11 = smov [#allocation14]   ;;  %s2546_s25 = smov [#allocation15]  }
  0x64   : > { %s414_s13 = sshll.u32 %s2545_s11, 4  ;;  %s430_s4 = sshll.u32 %s2546_s25, 4  ;;  %s415_s13 = int_to_ptr.vmem [resolvable:$true] %s414_s13  ;;  %s431_s4 = int_to_ptr.vmem [resolvable:$true] %s430_s4 }
  0x65   : > { %s2299_s6 = scalar_lea.vmem %s415_s13, 512  ;;  %p3164_p6 = scmp.ne.s32.totalorder %s3154_s19, 0 }
  0x66   : > { %p2300_p1 = scmp.ne.s32.totalorder %s415_s13, %s2299_s6  ;;  %p2307_p3 = scmp.lt.s32.totalorder %s415_s13, %s415_s13 }
  0x67   : > { %p3165_p12 = pneg %p3164_p6  ;;  %p2308_p4 = scmp.lt.s32.totalorder %s2299_s6, %s2299_s6 }
  0x69   : > { %p2302_p10 = pnand %p2300_p1, %p3165_p12  ;;  %p2309_p8 = por %p2308_p4, %p2307_p3 }
  0x6b   : > { %p2303_p5 = pneg %p2302_p10 }
  0x6d   : > { %p2310_p11 = pnand %p2309_p8, %p2303_p5 }
  0x6f   : > { %2313 = shalt.err (!%p2310_p11)
}
  0x70   : > { %s3166_s5 = smov 8   ;;  %s3167_s9 = smov 128  }
  0x71   : > { %2111 = dma.hbm_to_vmem [thread:$0]  (!%p3164_p6), %s3113_s8, 512, %s415_s13, [#allocation13], %s3167_s9, %s3167_s9, %s3166_s5  }
  0x72   : > { %s2325_s20 = scalar_lea.vmem %s431_s4, 512  ;;  %p3168_p2 = pmov %p3165_p12 }
  0x73   : > { %p2326_p7 = scmp.ne.s32.totalorder %s431_s4, %s2325_s20  ;;  %p2333_p12 = scmp.lt.s32.totalorder %s431_s4, %s431_s4 }
  0x74   : > { %p2334_p10 = scmp.lt.s32.totalorder %s2325_s20, %s2325_s20 }
  0x75   : > { %p2328_p0 = pnand %p2326_p7, %p3168_p2 }
  0x76   : > { %p2335_p5 = por %p2334_p10, %p2333_p12 }
  0x77   : > { %p2329_p1 = pneg %p2328_p0 }
  0x79   : > { %p2336_p3 = pnand %p2335_p5, %p2329_p1 }
  0x7b   : > { %2339 = shalt.err (!%p2336_p3)
}
  0x7c   : > { %2114 = dma.hbm_to_vmem [thread:$0]  (!%p3164_p6), %s3115_s10, 512, %s431_s4, [#allocation16], %s3167_s9, %s3167_s9, %s3166_s5  }
  0x7d   : > { %s3169_s0 = sld [smem:[#allocation33_spill]]  ;;  %s451_s19 = scalar_lea.vmem [#allocation3], %s2730_s21 }
  0x7e   : > { %s458_s6 = sshll.u32 %s451_s19, 4  ;;  %s2807_s20 = scalar_lea.hbm %s3107_s2, %s2733_s23  ;;  %s459_s6 = int_to_ptr.vmem [resolvable:$true] %s458_s6 }
  0x7f   : > { %s3170_s30 = sand.u32 1, %s2534_s27  }
  0x80   : > { %s448_s22 = scalar_lea.sflag [#allocation4], %s3170_s30 }
  0x83   : > { %s2800_s25 = scalar_lea.hbm %s3169_s0, %s2733_s23  ;;  %s2345_s9 = scalar_lea.hbm %s3169_s0, 256 }
  0x84   : > { %s2340_s1 = scalar_lea.hbm %s2800_s25, 128  ;;  %p2346_p11 = scmp.lt.s32.totalorder %s2800_s25, %s3169_s0 }
  0x85   : > { %p2341_p6 = scmp.ne.s32.totalorder %s2800_s25, %s2340_s1  ;;  %p2347_p7 = scmp.lt.s32.totalorder %s2345_s9, %s2340_s1 }
  0x87   : > { %p2343_p4 = pnand %p2341_p6, %p2755_p13  ;;  %p2348_p2 = por %p2347_p7, %p2346_p11 }
  0x89   : > { %p2344_p8 = pneg %p2343_p4 }
  0x8b   : > { %p2349_p0 = pnand %p2348_p2, %p2344_p8 }
  0x8d   : > { %2352 = shalt.err (!%p2349_p0)
}
  0x8e   : > { %s2353_s19 = scalar_lea.vmem %s459_s6, 128  ;;  %s2547_s24 = smov [#allocation3]  }
  0x8f   : > { %p2354_p1 = scmp.ne.s32.totalorder %s459_s6, %s2353_s19  ;;  %s2358_s15 = sshll.u32 %s2547_s24, 4  ;;  %s2359_s15 = int_to_ptr.vmem [resolvable:$false] %s2358_s15 }
  0x90   : > { %s2360_s30 = scalar_lea.vmem %s2359_s15, 256  ;;  %p2361_p5 = scmp.lt.s32.totalorder %s459_s6, %s2359_s15 }
  0x91   : > { %p2356_p12 = pnand %p2354_p1, %p2755_p13  ;;  %p2362_p3 = scmp.lt.s32.totalorder %s2360_s30, %s2353_s19 }
  0x93   : > { %p2357_p10 = pneg %p2356_p12  ;;  %p2363_p6 = por %p2362_p3, %p2361_p5 }
  0x95   : > { %p2364_p4 = pnand %p2363_p6, %p2357_p10 }
  0x97   : > { %2367 = shalt.err (!%p2364_p4)
}
  0x98   : > { %2118 = dma.hbm_to_vmem [thread:$0]  (!%p2735_p9), %s2800_s25, 128, %s459_s6, %s448_s22  }
  0x99   : > { %s487_s1 = scalar_lea.vmem [#allocation8], %s2730_s21  ;;  %s2832_s11 = scalar_lea.hbm %s3108_s3, %s2733_s23 }
  0x9a   : > { %s494_s4 = sshll.u32 %s487_s1, 4  ;;  %s2368_s13 = scalar_lea.hbm %s2807_s20, 128  ;;  %s495_s4 = int_to_ptr.vmem [resolvable:$true] %s494_s4 }
  0x9b   : > { %p2369_p8 = scmp.ne.s32.totalorder %s2807_s20, %s2368_s13  ;;  %s2373_s15 = scalar_lea.hbm %s3107_s2, 256 }
  0x9c   : > { %p2374_p2 = scmp.lt.s32.totalorder %s2807_s20, %s3107_s2  ;;  %p2375_p0 = scmp.lt.s32.totalorder %s2373_s15, %s2368_s13 }
  0x9d   : > { %p2371_p11 = pnand %p2369_p8, %p2755_p13 }
  0x9e   : > { %p2376_p1 = por %p2375_p0, %p2374_p2 }
  0x9f   : > { %p2372_p7 = pneg %p2371_p11 }
  0xa1   : > { %p2377_p12 = pnand %p2376_p1, %p2372_p7 }
  0xa3   : > { %2380 = shalt.err (!%p2377_p12)
}
  0xa4   : > { %s2381_s25 = scalar_lea.vmem %s495_s4, 128  ;;  %s2548_s23 = smov [#allocation8]  }
  0xa5   : > { %p2382_p10 = scmp.ne.s32.totalorder %s495_s4, %s2381_s25  ;;  %s2386_s6 = sshll.u32 %s2548_s23, 4  ;;  %s2387_s6 = int_to_ptr.vmem [resolvable:$false] %s2386_s6 }
  0xa6   : > { %s2388_s22 = scalar_lea.vmem %s2387_s6, 256  ;;  %p2389_p6 = scmp.lt.s32.totalorder %s495_s4, %s2387_s6 }
  0xa7   : > { %p2384_p5 = pnand %p2382_p10, %p2755_p13  ;;  %p2390_p4 = scmp.lt.s32.totalorder %s2388_s22, %s2381_s25 }
  0xa9   : > { %p2385_p3 = pneg %p2384_p5  ;;  %p2391_p8 = por %p2390_p4, %p2389_p6 }
  0xab   : > { %p2392_p11 = pnand %p2391_p8, %p2385_p3 }
  0xad   : > { %2395 = shalt.err (!%p2392_p11)
}
  0xae   : > { %2124 = dma.hbm_to_vmem [thread:$0]  (!%p2735_p9), %s2807_s20, 128, %s495_s4, %s2749_s18  }
  0xaf   : > { %s505_s0 = scalar_lea.vmem [#allocation9], %s2730_s21  ;;  %s3171_s5 = sand.u32 1, %s2538_s28  }
  0xb0   : > { %s512_s1 = sshll.u32 %s505_s0, 4  ;;  %s502_s9 = scalar_lea.sflag [#allocation10], %s3171_s5  ;;  %s513_s1 = int_to_ptr.vmem [resolvable:$true] %s512_s1 }
  0xb1   : > { %s2396_s13 = scalar_lea.hbm %s2832_s11, 128  ;;  %s2401_s15 = scalar_lea.hbm %s3108_s3, 256 }
  0xb2   : > { %p2397_p7 = scmp.ne.s32.totalorder %s2832_s11, %s2396_s13  ;;  %p2402_p1 = scmp.lt.s32.totalorder %s2832_s11, %s3108_s3 }
  0xb3   : > { %p2403_p12 = scmp.lt.s32.totalorder %s2401_s15, %s2396_s13 }
  0xb4   : > { %p2399_p2 = pnand %p2397_p7, %p2755_p13 }
  0xb5   : > { %p2404_p10 = por %p2403_p12, %p2402_p1 }
  0xb6   : > { %p2400_p0 = pneg %p2399_p2 }
  0xb8   : > { %p2405_p5 = pnand %p2404_p10, %p2400_p0 }
  0xba   : > { %2408 = shalt.err (!%p2405_p5)
}
  0xbb   : > { %s2409_s18 = scalar_lea.vmem %s513_s1, 128  ;;  %s2549_s21 = smov [#allocation9]  }
  0xbc   : > { %p2410_p3 = scmp.ne.s32.totalorder %s513_s1, %s2409_s18  ;;  %s2414_s20 = sshll.u32 %s2549_s21, 4  ;;  %s2415_s20 = int_to_ptr.vmem [resolvable:$false] %s2414_s20 }
  0xbd   : > { %s2416_s4 = scalar_lea.vmem %s2415_s20, 256  ;;  %p2417_p8 = scmp.lt.s32.totalorder %s513_s1, %s2415_s20 }
  0xbe   : > { %p2412_p6 = pnand %p2410_p3, %p2755_p13  ;;  %p2418_p11 = scmp.lt.s32.totalorder %s2416_s4, %s2409_s18 }
  0xc0   : > { %p2413_p4 = pneg %p2412_p6  ;;  %p2419_p7 = por %p2418_p11, %p2417_p8 }
  0xc2   : > { %p2420_p2 = pnand %p2419_p7, %p2413_p4 }
  0xc4   : > { %2423 = shalt.err (!%p2420_p2)
}
  0xc5   : > { %2127 = dma.hbm_to_vmem [thread:$0]  (!%p2735_p9), %s2832_s11, 128, %s513_s1, %s502_s9  }
  0xc6   : > { %p3172_p0 = scmp.ne.s32.totalorder %s3153_s16, 0 }
  0xc7   : > { %s2873_s12 = sand.u32 (!%p3172_p0), 1, %s2530_s26   ;;  %p3173_p13 = scmp.ne.s32.totalorder (!%p3172_p0), %s3150_s14, 0 }
  0xc8   : > { %521 = sbr.rel (%p3172_p0) target bundleno = 2044 (0x7fc), region = 68  ;;  %s2876_s23 = sshll.u32 (!%p3172_p0), %s2873_s12, 3 }
  0xc9   : > { %s524_s6 = scalar_lea.sflag (!%p3172_p0), [#allocation4], %s2873_s12  ;;  %s527_s22 = scalar_lea.vmem (!%p3172_p0), [#allocation3], %s2876_s23 }
  0xcd   : > { %2493 = dma.done.wait (%p3173_p13), %s524_s6, 128  }
  0xce   : > { %2495 = vsyncadd (%p3173_p13), %s524_s6, 4294967168  ;;  %s532_s16 = sand.u32 1, %s2652_s29   ;;  %s536_s11 = scalar_lea.vmem [#allocation6], %s2876_s23 }
  0xcf   : > { %s533_s17 = scalar_lea.sflag [#allocation7], %s532_s16 }
  0xd0   : > { %2497 = dma.done.wait (%p3173_p13), %s533_s17, 256  }
  0xd1   : > { %2499 = vsyncadd (%p3173_p13), %s533_s17, 4294967040  ;;  %s545_s0 = scalar_lea.vmem [#allocation8], %s2876_s23  ;;  %s551_s1 = scalar_lea.sflag [#allocation10], %s532_s16 }
  0xd2   : > { %s554_s5 = scalar_lea.vmem [#allocation9], %s2876_s23 }
  0xd3   : > { %2501 = dma.done.wait (%p3173_p13), %s551_s1, 128  }
  0xd4   : > { %2503 = vsyncadd (%p3173_p13), %s551_s1, 4294967168  ;;  %p3174_p9 = scmp.eq.s32.totalorder %s2652_s29, 0 }
  0xd6   : > { %2505 = dma.done.wait (%p3174_p9), [#allocation10], 512   ;;  %p3175_p1 = pmov %p3174_p9 }
  0xd8   : > { %2507 = vsyncadd (%p3175_p1), [#allocation10], 4294966784  ;;  %p3176_p12 = pmov %p3175_p1 }
  0xd9   : > { %p3177_p10 = pmov %p3175_p1 }
  0xda   : > { %2509 = dma.done.wait (%p3176_p12), [#allocation13], 1024  }
  0xdb   : > { %2511 = vsyncadd (%p3177_p10), [#allocation13], 4294966272  ;;  %p3178_p5 = pmov %p3175_p1 }
  0xdc   : > { %p3179_p3 = pmov %p3175_p1 }
  0xdd   : > { %2513 = dma.done.wait (%p3178_p5), [#allocation16], 512  }
  0xde   : > { %2515 = vsyncadd (%p3179_p3), [#allocation16], 4294966784  ;;  %v2550_v0 = vmov 0.0   ;;  %vm2551_vm0 = vmmov 0   ;;  %v637_v1 = vld [vmem:[#allocation11 + $0x18] sm:$0xff]  ;;  %v636_v2 = vld [vmem:[#allocation11 + $0x10] sm:$0xff] }
  0xdf   : > { %1990 = vmatprep.subr.mxu0 %v2550_v0  ;;  %2001 = vmatprep.subr.mxu1 %v2550_v0  ;;  %v723_v3 = vld [vmem:[#allocation12 + $0x18] sm:$0xff]  ;;  %v722_v4 = vld [vmem:[#allocation12 + $0x10] sm:$0xff]  ;;  %v635_v5 = vld [vmem:[#allocation11 + $0x8] sm:$0xff]  ;;  %vm645_vm1 = vcmask 261120   ;;  %vm893_vm2 = vcmask 64512   ;;  %s2552_s13 = smov 120  }
  0xe0   : > { %1998 = vmatprep.mubr.msk.f32.mxu0 %vm2551_vm0, %v2550_v0  ;;  %2009 = vmatprep.mubr.msk.f32.mxu1 %vm2551_vm0, %v2550_v0  ;;  %v721_v6 = vld [vmem:[#allocation12 + $0x8] sm:$0xff]  ;;  %v634_v7 = vld [vmem:[#allocation11] sm:$0xff]  ;;  %v808_v9 = vld [vmem:[#allocation14 + $0x18] sm:$0xff]  ;;  %s3180_s15 = sld [smem:[#allocation38_spill]]  ;;  %s2553_s21 = smov 112   ;;  %vm1225_vm4 = vcmask 130112  }
  0xe1   : > { %1991 = vmatpush3.msra.mxu0 %v637_v1  ;;  %2002 = vmatpush3.msra.mxu1 %v723_v3  ;;  %v633_v8 = vld [vmem:[%s527_s22] sm:$0xff]  ;;  %v719_v11 = vld [vmem:[%s536_s11] sm:$0xff]  ;;  %s3181_s18 = sld [smem:[#allocation36_spill]]  ;;  %s2554_s20 = smov 104   ;;  %vm1396_vm5 = vcmask 195712   ;;  %vm1567_vm6 = vcmask 261312  }
  0xe2   : > { %1992 = vmatprep.subr.mxu0 %v2550_v0  ;;  %2003 = vmatprep.subr.mxu1 %v2550_v0  ;;  %v720_v10 = vld [vmem:[#allocation12] sm:$0xff]  ;;  %v807_v12 = vld [vmem:[#allocation14 + $0x10] sm:$0xff]  ;;  %v806_v13 = vld [vmem:[#allocation14 + $0x8] sm:$0xff]  ;;  %s1925_s4 = sshll.u32 %s2873_s12, 5  ;;  %s2555_s22 = smov 8  }
  0xe3   : > { %1993 = vmatpush3.msra.mxu0 %v636_v2  ;;  %2004 = vmatpush3.msra.mxu1 %v722_v4  ;;  %v805_v14 = vld [vmem:[#allocation14] sm:$0xff]  ;;  %v1928_v17 = vld [vmem:[%s3112_s7] ss:$0 sm:$0xff]  ;;  %s2982_s6 = scalar_lea.vmem [#allocation18], %s1925_s4  ;;  %s2556_s16 = smov 16  }
  0xe4   : > { %1994 = vmatprep.subr.mxu0 %v2550_v0  ;;  %2005 = vmatprep.subr.mxu1 %v2550_v0  ;;  %v804_v15 = vld [vmem:[%s545_s0] sm:$0xff]  ;;  %v890_v29 = vld [vmem:[%s554_s5] sm:$0xff]  ;;  %s2557_s17 = smov 24   ;;  %s3182_s11 = sld [smem:[#allocation31_spill]] }
  0xe5   : > { %1995 = vmatpush3.msra.mxu0 %v635_v5  ;;  %2006 = vmatpush3.msra.mxu1 %v721_v6  ;;  %vm891_vm3 = vcmp.eq.f32.partialorder %v890_v29, 0.0  ;;  %v1575_v29 = vld [vmem:[#allocation15 + $0x8] sm:$0xff]  ;;  %s1953_s0 = sshll.u32 %s2652_s29, 9  ;;  %s1691_s1 = sshll.u32 %s2982_s6, 4  ;;  %s3033_s1 = int_to_ptr.vmem [resolvable:$true] %s1691_s1 }
  0xe6   : > { %1996 = vmatprep.subr.mxu0 %v2550_v0  ;;  %2007 = vmatprep.subr.mxu1 %v2550_v0  ;;  %v1930_v22 = vld [vmem:[%s3180_s15] ss:$0 sm:$0xff]  ;;  %v892_v30 = vsel %vm891_vm3, -1e+20, %v2550_v0  ;;  %s3183_s9 = sld [smem:[#allocation41_spill]]  ;;  %s1665_s19 = scalar_lea.sflag [#allocation19], %s2873_s12 }
  0xe7   : > { %1997 = vmatpush3.msra.mxu0 %v634_v7  ;;  %2008 = vmatpush3.msra.mxu1 %v720_v10  ;;  %v1926_v24 = vld [vmem:[%s3181_s18] ss:$0 sm:$0xff]  ;;  %s2424_s24 = scalar_lea.vmem %s3033_s1, 512  ;;  %s2558_s15 = smov [#allocation18]  }
  0xe8   : > { %1999 = vmatmul.mubr.msk.f32.vlgmr.msra.gmra.mxu0 %vm645_vm1, %v633_v8  ;;  %2012 = vmatprep.subr.mxu0 %v2550_v0  ;;  %p2425_p6 = scmp.ne.s32.totalorder %s3033_s1, %s2424_s24  ;;  %s2428_s30 = sshll.u32 %s2558_s15, 4  ;;  %s2429_s30 = int_to_ptr.vmem [resolvable:$false] %s2428_s30 }
  0xe9   : > { %2013 = vmatpush3.msra.mxu0 %v808_v9  ;;  %2010 = vmatmul.mubr.msk.f32.vlgmr.msra.gmra.mxu1 %vm645_vm1, %v719_v11  ;;  %s2430_s25 = scalar_lea.vmem %s2429_s30, 1024  ;;  %p2431_p7 = scmp.lt.s32.totalorder %s3033_s1, %s2429_s30 }
  0xea   : > { %2014 = vmatprep.subr.mxu0 %v2550_v0  ;;  %2020 = vmatprep.mubr.msk.f32.mxu0 %vm2551_vm0, %v2550_v0  ;;  %p3184_p4 = scmp.ne.s32.totalorder %s3182_s11, 0  ;;  %p2432_p2 = scmp.lt.s32.totalorder %s2430_s25, %s2424_s24 }
  0xeb   : > { %2015 = vmatpush3.msra.mxu0 %v807_v12  ;;  %2023 = vmatprep.subr.mxu1 %v2550_v0 }
  0xec   : > { %2016 = vmatprep.subr.mxu0 %v2550_v0  ;;  %2025 = vmatprep.mubr.msk.f32.mxu1 %vm2551_vm0, %v2550_v0  ;;  %p2426_p8 = pnand %p2425_p6, %p3184_p4  ;;  %p2433_p0 = por %p2432_p2, %p2431_p7 }
  0xed   : > { %2017 = vmatpush3.msra.mxu0 %v806_v13 }
  0xee   : > { %2018 = vmatprep.subr.mxu0 %v2550_v0  ;;  %p2427_p11 = pneg %p2426_p8 }
  0xef   : > { %2019 = vmatpush3.msra.mxu0 %v805_v14 }
  0xf0   : > { %2021 = vmatmul.mubr.msk.f32.vlgmr.msra.gmra.mxu0 %vm645_vm1, %v804_v15  ;;  %2043 = vmatprep.subr.mxu0 %v2550_v0  ;;  %p2434_p13 = pnand %p2433_p0, %p2427_p11 }
  0xf1   : > { %2045 = vmatprep.mubr.msk.f32.mxu0 %vm2551_vm0, %v2550_v0 }
 0x1a8   : > { %v715_v16 = vpop.f32.mrf.mxu0 }
 0x1a9   : > { %v800_v19 = vpop.f32.mrf.mxu1  ;;  %v2953_v28 = vadd.f32 %v1926_v24, %v715_v16 }
 0x1aa   : > { %v2000_v18 = vpop.f32.mrf.mxu0  ;;  %v801_v20 = vadd.f32 %v1928_v17, %v800_v19 }
 0x1ab   : > { %v2011_v21 = vpop.f32.mrf.mxu1 }
 0x1ac   : > { %1057 = vrot.lane.b32.xlu1 %v801_v20, %s2552_s13  ;;  %2024 = vmatpush3.xpose.msk.msra.mxu1 %vm893_vm2, %v801_v20 }
 0x1ad   : > { %2028 = vmatprep.subr.mxu1 %v2550_v0 }
 0x1b0   : > { %v885_v23 = vpop.f32.mrf.mxu0 }
 0x1b1   : > { %v886_v25 = vadd.f32 %v1930_v22, %v885_v23 }
 0x1b2   : > { %v2022_v26 = vpop.f32.mrf.mxu0 }
 0x1b3   : > { %v889_v27 = vmul.f32 0.17677669, %v886_v25 }
 0x1b5   : > { %1055 = vrot.lane.b32.xlu1 %v889_v27, %s2552_s13  ;;  %2026 = vmatmul.mubr.msk.f32.vlgmr.msra.gmra.mxu1 %vm893_vm2, %v889_v27 }
 0x1b6   : > { %2029 = vmatpush3.msra.mxu1 %v2953_v28  ;;  %2030 = vmatprep.mubr.msk.f32.mxu1 %vm2551_vm0, %v2550_v0 }
 0x1b7   : > { %2033 = vmatprep.subr.mxu1 %v2550_v0 }
 0x1b9   : > { %1227 = vrot.lane.b32.xlu1 %v889_v27, %s2553_s21 }
 0x1bd   : > { %1400 = vrot.lane.b32.xlu1 %v801_v20, %s2554_s20 }
 0x1c1   : > { %1398 = vrot.lane.b32.xlu1 %v889_v27, %s2554_s20  ;;  %v1577_v27 = vld [vmem:[#allocation15 + $0x18] sm:$0xff] }
 0x21e   : > { %v1058_v40 = vpop.permute.xlu1 %1057 }
 0x227   : > { %v1056_v41 = vpop.permute.xlu1 %1055 }
 0x22b   : > { %v1228_v42 = vpop.permute.xlu1 %1227 }
 0x22f   : > { %v1401_v45 = vpop.permute.xlu1 %1400 }
 0x233   : > { %v1399_v46 = vpop.permute.xlu1 %1398 }
 0x275   : > { %v966_v31 = vpop.f32.mrf.mxu1 }
 0x276   : > { %v967_v32 = vadd.f32 %v966_v31, %v892_v30  ;;  %v1574_v31 = vld [vmem:[#allocation15] sm:$0xff] }
 0x277   : > { %v2027_v33 = vpop.f32.mrf.mxu1 }
 0x278   : > { %v970_v34 = vsel %vm893_vm2, %v967_v32, -inf }
 0x279   : > { %971 = vmax.xlane.f32.xlu0 %v970_v34 }
 0x302   : > { %v972_v35 = vpop.xlane.xlu0 %971 }
 0x303   : > { %v973_v36 = vsub.f32 %v967_v32, %v972_v35 }
 0x305   : > { %v974_v37 = vmul.f32 1.442695, %v973_v36 }
 0x307   : > { %2192 = vpow2.f32 %v974_v37 }
 0x314   : > { %v2193_v38 = vpop.eup %2192 }
 0x315   : > { %v976_v39 = vsel %vm893_vm2, %v2193_v38, 0.0 }
 0x316   : > { %977 = vadd.xlane.f32.xlu0 %v976_v39 }
 0x32c   : > { %1229 = vrot.lane.b32.xlu0 %v801_v20, %s2553_s21 }
 0x39f   : > { %v978_v43 = vpop.xlane.xlu0 %977 }
 0x3a0   : > { %2194 = vrcp.f32 %v978_v43 }
 0x3a3   : > { %v1230_v44 = vpop.permute.xlu0 %1229 }
 0x3a4   : > { %2044 = vmatpush3.xpose.msk.msra.mxu0 %vm893_vm2, %v1230_v44 }
 0x3a5   : > { %2053 = vmatprep.subr.mxu0 %v2550_v0 }
 0x3a7   : > { %2046 = vmatmul.mubr.msk.f32.vlgmr.msra.gmra.mxu0 %vm893_vm2, %v1228_v42 }
 0x3a8   : > { %2054 = vmatpush3.xpose.msk.msra.mxu0 %vm893_vm2, %v1401_v45  ;;  %2055 = vmatprep.mubr.msk.f32.mxu0 %vm2551_vm0, %v2550_v0 }
 0x3a9   : > { %2063 = vmatprep.subr.mxu0 %v2550_v0 }
 0x3ab   : > { %2056 = vmatmul.mubr.msk.f32.vlgmr.msra.gmra.mxu0 %vm893_vm2, %v1399_v46 }
 0x3ac   : > { %2071 = vmatprep.mubr.msk.f32.mxu0 %vm2551_vm0, %v2550_v0  ;;  %2064 = vmatpush3.msra.mxu0 %v1577_v27 }
 0x3ad   : > { %v2195_v47 = vpop.eup %2194  ;;  %2065 = vmatprep.subr.mxu0 %v2550_v0 }
 0x3ae   : > { %v980_v48 = vmul.f32 %v2195_v47, %v2193_v38 }
 0x3b0   : > { %2031 = vmatmul.mubr.msk.f32.vlgmr.msra.gmra.mxu1 %vm893_vm2, %v980_v48  ;;  %1569 = vst.msk [vmem:[%s2982_s6] sm:$0xff] %vm893_vm2, %v980_v48 }
 0x3b1   : > { %2034 = vmatpush3.xpose.msk.msra.mxu1 %vm893_vm2, %v1058_v40  ;;  %2035 = vmatprep.mubr.msk.f32.mxu1 %vm2551_vm0, %v2550_v0 }
 0x3b2   : > { %2038 = vmatprep.subr.mxu1 %v2550_v0 }
 0x3b4   : > { %2036 = vmatmul.mubr.msk.f32.vlgmr.msra.gmra.mxu1 %vm893_vm2, %v1056_v41 }
 0x3b5   : > { %2040 = vmatprep.mubr.msk.f32.mxu1 %vm2551_vm0, %v2550_v0 }
 0x467   : > { %v1301_v49 = vpop.f32.mrf.mxu0 }
 0x468   : > { %v1302_v50 = vadd.f32 %v1301_v49, %v892_v30 }
 0x469   : > { %v2047_v51 = vpop.f32.mrf.mxu0 }
 0x46a   : > { %v1305_v52 = vsel %vm893_vm2, %v1302_v50, -inf }
 0x46b   : > { %1306 = vmax.xlane.f32.xlu0 %v1305_v52  ;;  %v1472_v53 = vpop.f32.mrf.mxu0 }
 0x46c   : > { %v1473_v60 = vadd.f32 %v1472_v53, %v892_v30 }
 0x46d   : > { %v2057_v54 = vpop.f32.mrf.mxu0 }
 0x46e   : > { %v1476_v62 = vsel %vm893_vm2, %v1473_v60, -inf }
 0x470   : > { %v1050_v55 = vpop.f32.mrf.mxu1 }
 0x471   : > { %1054 = vst.msk [vmem:[#allocation2] sm:$0xff] %vm893_vm2, %v1050_v55 }
 0x472   : > { %v2032_v56 = vpop.f32.mrf.mxu1 }
 0x474   : > { %v1129_v57 = vpop.f32.mrf.mxu1 }
 0x475   : > { %v1130_v58 = vadd.f32 %v1129_v57, %v892_v30 }
 0x476   : > { %v2037_v59 = vpop.f32.mrf.mxu1 }
 0x477   : > { %v1133_v61 = vsel %vm893_vm2, %v1130_v58, -inf }
 0x478   : > { %1134 = vmax.xlane.f32.xlu1 %v1133_v61 }
 0x47c   : > { %1477 = vmax.xlane.f32.xlu1 %v1476_v62 }
 0x4f4   : > { %v1307_v63 = vpop.xlane.xlu0 %1306 }
 0x4f5   : > { %v1308_v1 = vsub.f32 %v1302_v50, %v1307_v63 }
 0x4f7   : > { %v1309_v2 = vmul.f32 1.442695, %v1308_v1 }
 0x4f9   : > { %2196 = vpow2.f32 %v1309_v2 }
 0x501   : > { %v1135_v3 = vpop.xlane.xlu1 %1134 }
 0x502   : > { %v1136_v11 = vsub.f32 %v1130_v58, %v1135_v3 }
 0x504   : > { %v1137_v12 = vmul.f32 1.442695, %v1136_v11 }
 0x505   : > { %v1478_v4 = vpop.xlane.xlu1 %1477 }
 0x506   : > { %v2197_v5 = vpop.eup %2196  ;;  %v1479_v6 = vsub.f32 %v1473_v60, %v1478_v4 }
 0x507   : > { %v1311_v7 = vsel %vm893_vm2, %v2197_v5, 0.0 }
 0x508   : > { %v1480_v8 = vmul.f32 1.442695, %v1479_v6  ;;  %1312 = vadd.xlane.f32.xlu0 %v1311_v7 }
 0x50a   : > { %2198 = vpow2.f32 %v1480_v8 }
 0x50b   : > { %2200 = vpow2.f32 %v1137_v12 }
 0x517   : > { %v2199_v9 = vpop.eup %2198 }
 0x518   : > { %v1482_v10 = vsel %vm893_vm2, %v2199_v9, 0.0  ;;  %v2201_v13 = vpop.eup %2200 }
 0x519   : > { %1483 = vadd.xlane.f32.xlu1 %v1482_v10  ;;  %v1139_v14 = vsel %vm893_vm2, %v2201_v13, 0.0 }
 0x51e   : > { %1145 = vrot.lane.b32.xlu0 %v2953_v28, %s2552_s13  ;;  %s3031_s13 = scalar_lea.hbm %s3183_s9, %s1953_s0 }
 0x52a   : > { %1316 = vrot.lane.b32.xlu1 %v2953_v28, %s2553_s21 }
 0x54e   : > { %1140 = vadd.xlane.f32.xlu1 %v1139_v14 }
 0x55f   : > { %1487 = vrot.lane.b32.xlu1 %v2953_v28, %s2554_s20  ;;  %v1576_v28 = vld [vmem:[#allocation15 + $0x10] sm:$0xff] }
 0x560   : > { %2066 = vmatpush3.msra.mxu0 %v1576_v28 }
 0x561   : > { %2067 = vmatprep.subr.mxu0 %v2550_v0 }
 0x562   : > { %2068 = vmatpush3.msra.mxu0 %v1575_v29 }
 0x563   : > { %2069 = vmatprep.subr.mxu0 %v2550_v0 }
 0x564   : > { %2070 = vmatpush3.msra.mxu0 %v1574_v31 }
 0x591   : > { %v1313_v15 = vpop.xlane.xlu0 %1312 }
 0x592   : > { %2202 = vrcp.f32 %v1313_v15 }
 0x595   : > { %v1146_v16 = vpop.permute.xlu0 %1145 }
 0x596   : > { %2039 = vmatpush3.msra.mxu1 %v1146_v16 }
 0x597   : > { %2048 = vmatprep.subr.mxu1 %v2550_v0 }
 0x59f   : > { %v2203_v17 = vpop.eup %2202 }
 0x5a0   : > { %v1315_v18 = vmul.f32 %v2203_v17, %v2197_v5 }
 0x5a2   : > { %v1484_v19 = vpop.xlane.xlu1 %1483  ;;  %1571 = vst.msk [vmem:[%s2982_s6 + $0x10] sm:$0xff] %vm893_vm2, %v1315_v18 }
 0x5a3   : > { %2204 = vrcp.f32 %v1484_v19 }
 0x5a6   : > { %v1317_v22 = vpop.permute.xlu1 %1316 }
 0x5b0   : > { %v2205_v20 = vpop.eup %2204 }
 0x5b1   : > { %v1486_v21 = vmul.f32 %v2205_v20, %v2199_v9 }
 0x5b3   : > { %1572 = vst.msk [vmem:[%s2982_s6 + $0x18] sm:$0xff] %vm893_vm2, %v1486_v21 }
 0x5d7   : > { %v1141_v23 = vpop.xlane.xlu1 %1140 }
 0x5d8   : > { %2206 = vrcp.f32 %v1141_v23 }
 0x5db   : > { %v1488_v26 = vpop.permute.xlu1 %1487 }
 0x5e5   : > { %v2207_v24 = vpop.eup %2206 }
 0x5e6   : > { %v1143_v25 = vmul.f32 %v2207_v24, %v2201_v13 }
 0x5e8   : > { %2041 = vmatmul.mubr.msk.f32.vlgmr.msra.gmra.mxu1 %vm893_vm2, %v1143_v25  ;;  %1570 = vst.msk [vmem:[%s2982_s6 + $0x8] sm:$0xff] %vm893_vm2, %v1143_v25 }
 0x5e9   : > { %2049 = vmatpush3.msra.mxu1 %v1317_v22  ;;  %2050 = vmatprep.mubr.msk.f32.mxu1 %vm2551_vm0, %v2550_v0 }
 0x5ea   : > { %2058 = vmatprep.subr.mxu1 %v2550_v0 }
 0x5ec   : > { %2051 = vmatmul.mubr.msk.f32.vlgmr.msra.gmra.mxu1 %vm893_vm2, %v1315_v18 }
 0x5ed   : > { %2059 = vmatpush3.msra.mxu1 %v1488_v26  ;;  %2060 = vmatprep.mubr.msk.f32.mxu1 %vm2551_vm0, %v2550_v0 }
 0x5f0   : > { %2061 = vmatmul.mubr.msk.f32.vlgmr.msra.gmra.mxu1 %vm893_vm2, %v1486_v21 }
 0x6a8   : > { %v1217_v30 = vpop.f32.mrf.mxu1 }
 0x6a9   : > { %1222 = vrot.lane.b32.xlu0 %v1217_v30, %s2555_s22 }
 0x6aa   : > { %v2042_v32 = vpop.f32.mrf.mxu1 }
 0x6ac   : > { %v1388_v33 = vpop.f32.mrf.mxu1 }
 0x6ad   : > { %1393 = vrot.lane.b32.xlu1 %v1388_v33, %s2556_s16 }
 0x6ae   : > { %v2052_v34 = vpop.f32.mrf.mxu1 }
 0x6b0   : > { %v1559_v35 = vpop.f32.mrf.mxu1 }
 0x6b1   : > { %1564 = vrot.lane.b32.xlu0 %v1559_v35, %s2557_s17 }
 0x6b2   : > { %v2062_v36 = vpop.f32.mrf.mxu1 }
 0x71b   : > { %v1223_v37 = vpop.permute.xlu0 %1222 }
 0x71c   : > { %1226 = vst.msk [vmem:[#allocation2] sm:$0xff] %vm1225_vm4, %v1223_v37 }
 0x71f   : > { %v1394_v38 = vpop.permute.xlu1 %1393 }
 0x720   : > { %1397 = vst.msk [vmem:[#allocation2] sm:$0xff] %vm1396_vm5, %v1394_v38 }
 0x723   : > { %v1565_v0 = vpop.permute.xlu0 %1564 }
 0x724   : > { %1568 = vst.msk [vmem:[#allocation2] sm:$0xff] %vm1567_vm6, %v1565_v0 }
 0x72b   : > { %v1573_v39 = vld [vmem:[#allocation2] sm:$0xff] }
 0x72c   : > { %2072 = vmatmul.mubr.msk.f32.vlgmr.msra.gmra.mxu0 %vm645_vm1, %v1573_v39 }
 0x72d   : > { %2437 = shalt.err (!%p2434_p13)
}
 0x72e   : > { %s2438_s18 = scalar_lea.hbm %s3031_s13, 512  ;;  %s2442_s4 = scalar_lea.hbm %s3183_s9, 1024 }
 0x72f   : > { %p2439_p9 = scmp.ne.s32.totalorder %s3031_s13, %s2438_s18  ;;  %p2443_p10 = scmp.lt.s32.totalorder %s3031_s13, %s3183_s9 }
 0x730   : > { %p2444_p5 = scmp.lt.s32.totalorder %s2442_s4, %s2438_s18 }
 0x731   : > { %p2440_p1 = pnand %p2439_p9, %p3184_p4 }
 0x732   : > { %p2445_p3 = por %p2444_p5, %p2443_p10 }
 0x733   : > { %p2441_p12 = pneg %p2440_p1 }
 0x735   : > { %p2446_p6 = pnand %p2445_p3, %p2441_p12 }
 0x737   : > { %2449 = shalt.err (!%p2446_p6)
}
 0x738   : > { %s2559_s17 = smov 128   ;;  %s3185_s14 = sld [smem:[#allocation39_spill]] }
 0x739   : > { %2099 = dma.vmem_to_hbm [thread:$0]  (%p3184_p4), %s3033_s1, 512, %s3031_s13, %s1665_s19, %s2559_s17, %s2559_s17, %s2555_s22  }
 0x73a   : > { %s1948_s24 = sshll.u32 %s2652_s29, 7  ;;  %s625_s15 = scalar_lea.vmem [#allocation17], %s2876_s23 }
 0x73b   : > { %s1678_s30 = sshll.u32 %s625_s15, 4  ;;  %s3186_s21 = sld [smem:[#allocation40_spill]]  ;;  %s1679_s30 = int_to_ptr.vmem [resolvable:$true] %s1678_s30 }
 0x73c   : > { %s1660_s4 = scalar_lea.sflag [#allocation5], %s2873_s12  ;;  %s2450_s22 = scalar_lea.vmem %s1679_s30, 128 }
 0x73d   : > { %p2451_p8 = scmp.ne.s32.totalorder %s1679_s30, %s2450_s22  ;;  %s2560_s29 = smov [#allocation17]  }
 0x73e   : > { %v1944_v40 = vld [vmem:[%s3185_s14] ss:$0 sm:$0xff]  ;;  %s2454_s23 = sshll.u32 %s2560_s29, 4  ;;  %s2455_s23 = int_to_ptr.vmem [resolvable:$false] %s2454_s23 }
 0x73f   : > { %p2452_p11 = pnand %p2451_p8, %p3184_p4  ;;  %s2456_s1 = scalar_lea.vmem %s2455_s23, 256 }
 0x740   : > { %p2457_p2 = scmp.lt.s32.totalorder %s1679_s30, %s2455_s23  ;;  %p2458_p0 = scmp.lt.s32.totalorder %s2456_s1, %s2450_s22 }
 0x741   : > { %s3067_s20 = scalar_lea.hbm %s3186_s21, %s1948_s24  ;;  %p2453_p7 = pneg %p2452_p11 }
 0x742   : > { %p2459_p13 = por %p2458_p0, %p2457_p2 }
 0x744   : > { %p2460_p9 = pnand %p2459_p13, %p2453_p7 }
 0x7ec   : > { %v1654_v41 = vpop.f32.mrf.mxu0 }
 0x7ed   : > { %v1655_v42 = vadd.f32 %v1944_v40, %v1654_v41 }
 0x7ee   : > { %v2073_v43 = vpop.f32.mrf.mxu0 }
 0x7ef   : > { %1658 = vst.msk [vmem:[%s625_s15] sm:$0xff] %vm645_vm1, %v1655_v42 }
 0x7f0   : > { %2463 = shalt.err (!%p2460_p9)
}
 0x7f1   : > { %s2464_s13 = scalar_lea.hbm %s3067_s20, 128  ;;  %s2468_s6 = scalar_lea.hbm %s3186_s21, 256 }
 0x7f2   : > { %p2465_p1 = scmp.ne.s32.totalorder %s3067_s20, %s2464_s13  ;;  %p2469_p5 = scmp.lt.s32.totalorder %s3067_s20, %s3186_s21 }
 0x7f3   : > { %p2470_p3 = scmp.lt.s32.totalorder %s2468_s6, %s2464_s13 }
 0x7f4   : > { %p2466_p12 = pnand %p2465_p1, %p3184_p4 }
 0x7f5   : > { %p2471_p6 = por %p2470_p3, %p2469_p5 }
 0x7f6   : > { %p2467_p10 = pneg %p2466_p12 }
 0x7f8   : > { %p2472_p8 = pnand %p2471_p6, %p2467_p10 }
 0x7fa   : > { %2475 = shalt.err (!%p2472_p8)
}
 0x7fb   : > { %2098 = dma.vmem_to_hbm [thread:$0]  (%p3184_p4), %s1679_s30, 128, %s3067_s20, %s1660_s4  }
 0x7fc PF: > { %s3187_s0 = sld [smem:[#allocation28_spill]]  ;;  %p3190_p7 = scmp.ge.s32.totalorder %s2538_s28, 2 }
 0x7fd   : > { %s3188_s5 = sld [smem:[#allocation29_spill]] }
 0x802   : > { %s1706_s14 = sand.u32 1, %s3187_s0  }
 0x803   : > { %p3189_p11 = scmp.ne.s32.totalorder %s3188_s5, 0  ;;  %s1707_s24 = scalar_lea.sflag [#allocation5], %s1706_s14 }
 0x805   : > { %p2129_p2 = pnand %p3190_p7, %p3189_p11 }
 0x807   : > { %p2130_p0 = pneg %p2129_p2 }
 0x809   : > { %2517 = dma.done.wait (%p2130_p0), %s1707_s24, 128  }
 0x80a   : > { %2519 = vsyncadd (%p2130_p0), %s1707_s24, 4294967168  ;;  %s1716_s15 = scalar_lea.sflag [#allocation19], %s1706_s14 }
 0x80b   : > { %2521 = dma.done.wait (%p2130_p0), %s1716_s15, 512  }
 0x80c   : > { %2523 = vsyncadd (%p2130_p0), %s1716_s15, 4294966784  ;;  %s3191_s28 = sld [smem:[#allocation30_spill]]  ;;  %s3193_s25 = smov %s2530_s26 }
 0x80d   : > { %s3192_s11 = sld [smem:[#allocation32_spill]]  ;;  %s3194_s26 = smov %s2534_s27 }
 0x812   : > { %p38_p4 = scmp.ge.s32.totalorder %s3191_s28, 4  }
 0x813   : > { %s3195_s27 = smov %s3192_s11 }
 0x814   :  { %40 = sbr.rel (!%p38_p4) target bundleno = 23 (0x17), region = 183 }
 0x819   :  { %1721 = vsyncpa [#allocation4], 1 }
 0x81a   :  { %1723 = vsyncpa [#allocation4 + $0x1], 1 }
 0x81b   :  { %1724 = vsyncpa [#allocation7], 1 }
 0x81c   :  { %1726 = vsyncpa [#allocation7 + $0x1], 1 }
 0x81d   :  { %1727 = vsyncpa [#allocation10], 1 }
 0x81e   :  { %1729 = vsyncpa [#allocation10 + $0x1], 1 }
 0x81f   :  { %1730 = vsyncpa [#allocation13], 1 }
 0x820   :  { %1731 = vsyncpa [#allocation16], 1 }
 0x821   :  { %1732 = vsyncpa [#allocation5], 1 }
 0x822   :  { %1734 = vsyncpa [#allocation5 + $0x1], 1 }
 0x823   :  { %1735 = vsyncpa [#allocation19], 1 }
 0x824   :  { %1737 = vsyncpa [#allocation19 + $0x1], 1 }

// kernel: tpu_custom_call.1
= control target key start
LH: loop header
LB: loop body
LE: loop exit
PB: predicated region body
PF: predicated region fallthrough
CT: control target
= control target key end

     0   :  { %s3105_s0 = inlined_call_operand.hbm [shape: f32[2,8,32], index: 0, kind: input, shape index: {}]   ;;  %s3106_s1 = inlined_call_operand.hbm [shape: f32[2,8,32], index: 1, kind: input, shape index: {}]   ;;  %s3107_s2 = inlined_call_operand.hbm [shape: f32[2,8,32], index: 2, kind: input, shape index: {}]   ;;  %s3108_s3 = inlined_call_operand.hbm [shape: f32[2,8,8], index: 3, kind: input, shape index: {}]   ;;  %s3109_s4 = inlined_call_operand.hbm [shape: f32[32,32], index: 4, kind: input, shape index: {}]   ;;  %s3110_s5 = inlined_call_operand.vmem [shape: f32[1,32], index: 5, kind: input, shape index: {}]   ;;  %s3111_s6 = inlined_call_operand.hbm [shape: f32[32,32], index: 6, kind: input, shape index: {}]   ;;  %s3112_s7 = inlined_call_operand.vmem [shape: f32[1,32], index: 7, kind: input, shape index: {}]   ;;  %s3113_s8 = inlined_call_operand.hbm [shape: f32[32,32], index: 8, kind: input, shape index: {}]   ;;  %s3114_s9 = inlined_call_operand.vmem [shape: f32[1,32], index: 9, kind: input, shape index: {}]   ;;  %s3115_s10 = inlined_call_operand.hbm [shape: f32[32,32], index: 10, kind: input, shape index: {}]   ;;  %s3116_s11 = inlined_call_operand.vmem [shape: f32[1,32], index: 11, kind: input, shape index: {}]   ;;  %s3117_s12 = inlined_call_operand.hbm [shape: f32[2,8,32], index: 12, kind: output, shape index: {0}]   ;;  %s3118_s13 = inlined_call_operand.hbm [shape: f32[2,4,8,8], index: 13, kind: output, shape index: {1}]  }
   0x1   :  { %3140 = sst [smem:[#allocation33_spill]] %s3105_s0 }
   0x2   :  { %3141 = sst [smem:[#allocation34_spill]] %s3106_s1 }
   0x3   :  { %3142 = sst [smem:[#allocation35_spill]] %s3109_s4 }
   0x4   :  { %3143 = sst [smem:[#allocation36_spill]] %s3110_s5 }
   0x5   :  { %3144 = sst [smem:[#allocation37_spill]] %s3111_s6 }
   0x6   :  { %3145 = sst [smem:[#allocation38_spill]] %s3114_s9 }
   0x7   :  { %3146 = sst [smem:[#allocation39_spill]] %s3116_s11 }
   0x8   :  { %3147 = sst [smem:[#allocation40_spill]] %s3117_s12 }
   0x9   :  { %3148 = sst [smem:[#allocation41_spill]] %s3118_s13 }
   0xa   :  { %19 = vsyncpa [#allocation4], 0 }
   0xb   :  { %21 = vsyncpa [#allocation4 + $0x1], 0 }
   0xc   :  { %22 = vsyncpa [#allocation7], 0 }
   0xd   :  { %24 = vsyncpa [#allocation7 + $0x1], 0 }
   0xe   :  { %25 = vsyncpa [#allocation10], 0 }
   0xf   :  { %27 = vsyncpa [#allocation10 + $0x1], 0 }
  0x10   :  { %28 = vsyncpa [#allocation13], 0 }
  0x11   :  { %29 = vsyncpa [#allocation16], 0 }
  0x12   :  { %30 = vsyncpa [#allocation5], 0 }
  0x13   :  { %32 = vsyncpa [#allocation5 + $0x1], 0 }
  0x14   :  { %33 = vsyncpa [#allocation19], 0 }
  0x15   :  { %35 = vsyncpa [#allocation19 + $0x1], 0  ;;  %s2631_s25 = smov 0   ;;  %s2633_s26 = smov 0  }
  0x16   :  { %s2635_s27 = smov 0   ;;  %s2637_s28 = smov 0  }
  0x17 LB: > { %3149 = sst [smem:[#allocation28_spill]] %s2526_s25  ;;  %s2652_s29 = sadd.s32 4294967295, %s2538_s28   ;;  %s2538_s28 = sphi %s2637_s28, %s3191_s28   ;;  %s2534_s27 = sphi %s2635_s27, %s3195_s27   ;;  %s2530_s26 = sphi %s2633_s26, %s3194_s26   ;;  %s2526_s25 = sphi %s2631_s25, %s3193_s25  }
  0x18   : > { %s1900_s30 = sadd.s32 4294967294, %s2538_s28   ;;  %p61_p0 = scmp.ne.s32.totalorder %s2530_s26, %s2526_s25 }
  0x19   : > { %p3130_p1 = scmp.eq.s32.totalorder %s2652_s29, 0  ;;  %p331_p2 = scmp.eq.s32.totalorder %s2652_s29, 1 }
  0x1a   : > { %p337_p3 = scmp.eq.s32.totalorder %s1900_s30, 1  ;;  %p1901_p5 = scmp.ge.s32.totalorder %s2538_s28, 1 }
  0x1b   : > { %p2661_p4 = por %p3130_p1, %p61_p0  ;;  %p370_p7 = scmp.lt.s32.totalorder %s2538_s28, 3 }
  0x1c   : > { %p2666_p6 = por %p337_p3, %p61_p0  ;;  %s2540_s17 = smov [#allocation11]  }
  0x1d   : > { %s3150_s14 = scalar_select %p2661_p4, 1, 0 }
  0x1e   : > { %s3151_s15 = scalar_select %p2666_p6, 1, 0 }
  0x1f   : > { %p2671_p8 = pnand %p1901_p5, %p370_p7  ;;  %s382_s18 = sshll.u32 %s2540_s17, 4  ;;  %s383_s18 = int_to_ptr.vmem [resolvable:$true] %s382_s18 }
  0x20   : > { %3152 = sst [smem:[#allocation29_spill]] %s3151_s15  ;;  %s2541_s20 = smov [#allocation12]  }
  0x21   : > { %s3153_s16 = scalar_select %p2671_p8, 1, 0 }
  0x22   : > { %p2102_p9 = pneg %p2671_p8  ;;  %s398_s21 = sshll.u32 %s2541_s20, 4  ;;  %s399_s21 = int_to_ptr.vmem [resolvable:$true] %s398_s21 }
  0x23   : > { %s2219_s22 = scalar_lea.vmem %s383_s18, 512  ;;  %p2227_p5 = scmp.lt.s32.totalorder %s383_s18, %s383_s18 }
  0x24   : > { %p2680_p11 = pnand %p2102_p9, %p3130_p1  ;;  %p2220_p13 = scmp.ne.s32.totalorder %s383_s18, %s2219_s22 }
  0x25   : > { %p2228_p7 = scmp.lt.s32.totalorder %s2219_s22, %s2219_s22 }
  0x26   : > { %s3154_s19 = scalar_select %p2680_p11, 1, 0 }
  0x27   : > { %p3131_p12 = pneg %p2680_p11  ;;  %p2229_p10 = por %p2228_p7, %p2227_p5 }
  0x29   : > { %p2222_p0 = pnand %p2220_p13, %p3131_p12 }
  0x2b   : > { %p2223_p3 = pneg %p2222_p0 }
  0x2d   : > { %p2230_p9 = pnand %p2229_p10, %p2223_p3 }
  0x2f   : > { %2233 = shalt.err (!%p2230_p9)
}
  0x30   : > { %s3120_s23 = smov 128   ;;  %s3122_s24 = smov 8  }
  0x31   : > { %s3155_s4 = sld [smem:[#allocation35_spill]]  ;;  %s2245_s20 = scalar_lea.vmem %s399_s21, 512 }
  0x32   : > { %p2246_p13 = scmp.ne.s32.totalorder %s399_s21, %s2245_s20  ;;  %p2253_p10 = scmp.lt.s32.totalorder %s399_s21, %s399_s21 }
  0x33   : > { %p2254_p3 = scmp.lt.s32.totalorder %s2245_s20, %s2245_s20 }
  0x34   : > { %p2248_p0 = pnand %p2246_p13, %p3131_p12 }
  0x35   : > { %p2255_p7 = por %p2254_p3, %p2253_p10 }
  0x36   : > { %p2249_p5 = pneg %p2248_p0 }
  0x37   : > { %2105 = dma.hbm_to_vmem [thread:$0]  (!%p2680_p11), %s3155_s4, 512, %s383_s18, [#allocation10], %s3120_s23, %s3120_s23, %s3122_s24  }
  0x38   : > { %p2256_p9 = pnand %p2255_p7, %p2249_p5 }
  0x3a   : > { %2259 = shalt.err (!%p2256_p9)
}
  0x3b   : > { %s3156_s6 = sld [smem:[#allocation37_spill]]  ;;  %s2709_s18 = sadd.s32 1, %s2538_s28  }
  0x3c   : > { %3157 = sst [smem:[#allocation30_spill]] %s2709_s18  ;;  %s48_s30 = sadd.s32 1, %s2534_s27 }
  0x3d   : > { %s45_s17 = ssub.s32 %s2538_s28, %s2709_s18  ;;  %p55_p13 = scmp.ne.s32.totalorder %s2534_s27, %s2530_s26 }
  0x3e   : > { %p46_p0 = scmp.eq.s32.totalorder %s45_s17, 0  ;;  %p56_p5 = scmp.eq.s32.totalorder %s2538_s28, 0 }
  0x3f   : > { %p2719_p10 = por %p331_p2, %p55_p13  ;;  %p2139_p3 = scmp.lt.s32.totalorder %s2538_s28, 2 }
  0x40   : > { %s2725_s20 = scalar_select %p46_p0, %s2534_s27, %s48_s30  }
  0x41   : > { %2108 = dma.hbm_to_vmem [thread:$0]  (!%p2680_p11), %s3156_s6, 512, %s399_s21, [#allocation13], %s3120_s23, %s3120_s23, %s3122_s24  }
  0x42   : > { %s3158_s15 = scalar_select %p2719_p10, 1, 0 }
  0x43   : > { %3160 = sst [smem:[#allocation32_spill]] %s2725_s20  ;;  %p57_p7 = por %p56_p5, %p55_p13 }
  0x44   : > { %3159 = sst [smem:[#allocation31_spill]] %s3158_s15  ;;  %s3124_s22 = sand.u32 1, %s2534_s27  }
  0x45   : > { %s2730_s21 = sshll.u32 %s3124_s22, 3  ;;  %s2733_s23 = sshll.u32 %s2538_s28, 7 }
  0x46   : > { %p2735_p9 = pnand %p2139_p3, %p57_p7  ;;  %s3132_s24 = sand.u32 1, %s2538_s28  }
  0x47   : > { %s3162_s1 = sld [smem:[#allocation34_spill]]  ;;  %s469_s22 = scalar_lea.vmem [#allocation6], %s2730_s21 }
  0x48   : > { %s476_s20 = sshll.u32 %s469_s22, 4  ;;  %s2749_s18 = scalar_lea.sflag [#allocation7], %s3132_s24  ;;  %s477_s20 = int_to_ptr.vmem [resolvable:$true] %s476_s20 }
  0x49   : > { %p2755_p13 = pneg %p2735_p9 }
  0x4d   : > { %s2744_s30 = scalar_lea.hbm %s3162_s1, %s2733_s23  ;;  %s2265_s11 = scalar_lea.hbm %s3162_s1, 256 }
  0x4e   : > { %s2260_s25 = scalar_lea.hbm %s2744_s30, 128  ;;  %p2266_p3 = scmp.lt.s32.totalorder %s2744_s30, %s3162_s1 }
  0x4f   : > { %p2261_p2 = scmp.ne.s32.totalorder %s2744_s30, %s2260_s25  ;;  %p2267_p7 = scmp.lt.s32.totalorder %s2265_s11, %s2260_s25 }
  0x51   : > { %p2263_p0 = pnand %p2755_p13, %p2261_p2  ;;  %p2268_p1 = por %p2267_p7, %p2266_p3 }
  0x53   : > { %p2264_p5 = pneg %p2263_p0 }
  0x55   : > { %p2269_p12 = pnand %p2268_p1, %p2264_p5 }
  0x57   : > { %2272 = shalt.err (!%p2269_p12)
}
  0x58   : > { %s2273_s24 = scalar_lea.vmem %s477_s20, 128  ;;  %s2544_s15 = smov [#allocation6]  }
  0x59   : > { %p2274_p6 = scmp.ne.s32.totalorder %s477_s20, %s2273_s24  ;;  %s2278_s5 = sshll.u32 %s2544_s15, 4  ;;  %s2279_s5 = int_to_ptr.vmem [resolvable:$false] %s2278_s5 }
  0x5a   : > { %s2280_s9 = scalar_lea.vmem %s2279_s5, 256  ;;  %p2281_p2 = scmp.lt.s32.totalorder %s477_s20, %s2279_s5 }
  0x5b   : > { %p2276_p10 = pnand %p2274_p6, %p2755_p13  ;;  %p2282_p0 = scmp.lt.s32.totalorder %s2280_s9, %s2273_s24 }
  0x5d   : > { %p2277_p4 = pneg %p2276_p10  ;;  %p2283_p8 = por %p2282_p0, %p2281_p2 }
  0x5f   : > { %p2284_p11 = pnand %p2283_p8, %p2277_p4 }
  0x61   : > { %2287 = shalt.err (!%p2284_p11)
}
  0x62   : > { %2121 = dma.hbm_to_vmem [thread:$0]  (!%p2735_p9), %s2744_s30, 128, %s477_s20, %s2749_s18  }
  0x63   : > { %s2545_s11 = smov [#allocation14]   ;;  %s2546_s25 = smov [#allocation15]  }
  0x64   : > { %s414_s13 = sshll.u32 %s2545_s11, 4  ;;  %s430_s4 = sshll.u32 %s2546_s25, 4  ;;  %s415_s13 = int_to_ptr.vmem [resolvable:$true] %s414_s13  ;;  %s431_s4 = int_to_ptr.vmem [resolvable:$true] %s430_s4 }
  0x65   : > { %s2299_s6 = scalar_lea.vmem %s415_s13, 512  ;;  %p3164_p6 = scmp.ne.s32.totalorder %s3154_s19, 0 }
  0x66   : > { %p2300_p1 = scmp.ne.s32.totalorder %s415_s13, %s2299_s6  ;;  %p2307_p3 = scmp.lt.s32.totalorder %s415_s13, %s415_s13 }
  0x67   : > { %p3165_p12 = pneg %p3164_p6  ;;  %p2308_p4 = scmp.lt.s32.totalorder %s2299_s6, %s2299_s6 }
  0x69   : > { %p2302_p10 = pnand %p2300_p1, %p3165_p12  ;;  %p2309_p8 = por %p2308_p4, %p2307_p3 }
  0x6b   : > { %p2303_p5 = pneg %p2302_p10 }
  0x6d   : > { %p2310_p11 = pnand %p2309_p8, %p2303_p5 }
  0x6f   : > { %2313 = shalt.err (!%p2310_p11)
}
  0x70   : > { %s3166_s5 = smov 8   ;;  %s3167_s9 = smov 128  }
  0x71   : > { %2111 = dma.hbm_to_vmem [thread:$0]  (!%p3164_p6), %s3113_s8, 512, %s415_s13, [#allocation13], %s3167_s9, %s3167_s9, %s3166_s5  }
  0x72   : > { %s2325_s20 = scalar_lea.vmem %s431_s4, 512  ;;  %p3168_p2 = pmov %p3165_p12 }
  0x73   : > { %p2326_p7 = scmp.ne.s32.totalorder %s431_s4, %s2325_s20  ;;  %p2333_p12 = scmp.lt.s32.totalorder %s431_s4, %s431_s4 }
  0x74   : > { %p2334_p10 = scmp.lt.s32.totalorder %s2325_s20, %s2325_s20 }
  0x75   : > { %p2328_p0 = pnand %p2326_p7, %p3168_p2 }
  0x76   : > { %p2335_p5 = por %p2334_p10, %p2333_p12 }
  0x77   : > { %p2329_p1 = pneg %p2328_p0 }
  0x79   : > { %p2336_p3 = pnand %p2335_p5, %p2329_p1 }
  0x7b   : > { %2339 = shalt.err (!%p2336_p3)
}
  0x7c   : > { %2114 = dma.hbm_to_vmem [thread:$0]  (!%p3164_p6), %s3115_s10, 512, %s431_s4, [#allocation16], %s3167_s9, %s3167_s9, %s3166_s5  }
  0x7d   : > { %s3169_s0 = sld [smem:[#allocation33_spill]]  ;;  %s451_s19 = scalar_lea.vmem [#allocation3], %s2730_s21 }
  0x7e   : > { %s458_s6 = sshll.u32 %s451_s19, 4  ;;  %s2807_s20 = scalar_lea.hbm %s3107_s2, %s2733_s23  ;;  %s459_s6 = int_to_ptr.vmem [resolvable:$true] %s458_s6 }
  0x7f   : > { %s3170_s30 = sand.u32 1, %s2534_s27  }
  0x80   : > { %s448_s22 = scalar_lea.sflag [#allocation4], %s3170_s30 }
  0x83   : > { %s2800_s25 = scalar_lea.hbm %s3169_s0, %s2733_s23  ;;  %s2345_s9 = scalar_lea.hbm %s3169_s0, 256 }
  0x84   : > { %s2340_s1 = scalar_lea.hbm %s2800_s25, 128  ;;  %p2346_p11 = scmp.lt.s32.totalorder %s2800_s25, %s3169_s0 }
  0x85   : > { %p2341_p6 = scmp.ne.s32.totalorder %s2800_s25, %s2340_s1  ;;  %p2347_p7 = scmp.lt.s32.totalorder %s2345_s9, %s2340_s1 }
  0x87   : > { %p2343_p4 = pnand %p2341_p6, %p2755_p13  ;;  %p2348_p2 = por %p2347_p7, %p2346_p11 }
  0x89   : > { %p2344_p8 = pneg %p2343_p4 }
  0x8b   : > { %p2349_p0 = pnand %p2348_p2, %p2344_p8 }
  0x8d   : > { %2352 = shalt.err (!%p2349_p0)
}
  0x8e   : > { %s2353_s19 = scalar_lea.vmem %s459_s6, 128  ;;  %s2547_s24 = smov [#allocation3]  }
  0x8f   : > { %p2354_p1 = scmp.ne.s32.totalorder %s459_s6, %s2353_s19  ;;  %s2358_s15 = sshll.u32 %s2547_s24, 4  ;;  %s2359_s15 = int_to_ptr.vmem [resolvable:$false] %s2358_s15 }
  0x90   : > { %s2360_s30 = scalar_lea.vmem %s2359_s15, 256  ;;  %p2361_p5 = scmp.lt.s32.totalorder %s459_s6, %s2359_s15 }
  0x91   : > { %p2356_p12 = pnand %p2354_p1, %p2755_p13  ;;  %p2362_p3 = scmp.lt.s32.totalorder %s2360_s30, %s2353_s19 }
  0x93   : > { %p2357_p10 = pneg %p2356_p12  ;;  %p2363_p6 = por %p2362_p3, %p2361_p5 }
  0x95   : > { %p2364_p4 = pnand %p2363_p6, %p2357_p10 }
  0x97   : > { %2367 = shalt.err (!%p2364_p4)
}
  0x98   : > { %2118 = dma.hbm_to_vmem [thread:$0]  (!%p2735_p9), %s2800_s25, 128, %s459_s6, %s448_s22  }
  0x99   : > { %s487_s1 = scalar_lea.vmem [#allocation8], %s2730_s21  ;;  %s2832_s11 = scalar_lea.hbm %s3108_s3, %s2733_s23 }
  0x9a   : > { %s494_s4 = sshll.u32 %s487_s1, 4  ;;  %s2368_s13 = scalar_lea.hbm %s2807_s20, 128  ;;  %s495_s4 = int_to_ptr.vmem [resolvable:$true] %s494_s4 }
  0x9b   : > { %p2369_p8 = scmp.ne.s32.totalorder %s2807_s20, %s2368_s13  ;;  %s2373_s15 = scalar_lea.hbm %s3107_s2, 256 }
  0x9c   : > { %p2374_p2 = scmp.lt.s32.totalorder %s2807_s20, %s3107_s2  ;;  %p2375_p0 = scmp.lt.s32.totalorder %s2373_s15, %s2368_s13 }
  0x9d   : > { %p2371_p11 = pnand %p2369_p8, %p2755_p13 }
  0x9e   : > { %p2376_p1 = por %p2375_p0, %p2374_p2 }
  0x9f   : > { %p2372_p7 = pneg %p2371_p11 }
  0xa1   : > { %p2377_p12 = pnand %p2376_p1, %p2372_p7 }
  0xa3   : > { %2380 = shalt.err (!%p2377_p12)
}
  0xa4   : > { %s2381_s25 = scalar_lea.vmem %s495_s4, 128  ;;  %s2548_s23 = smov [#allocation8]  }
  0xa5   : > { %p2382_p10 = scmp.ne.s32.totalorder %s495_s4, %s2381_s25  ;;  %s2386_s6 = sshll.u32 %s2548_s23, 4  ;;  %s2387_s6 = int_to_ptr.vmem [resolvable:$false] %s2386_s6 }
  0xa6   : > { %s2388_s22 = scalar_lea.vmem %s2387_s6, 256  ;;  %p2389_p6 = scmp.lt.s32.totalorder %s495_s4, %s2387_s6 }
  0xa7   : > { %p2384_p5 = pnand %p2382_p10, %p2755_p13  ;;  %p2390_p4 = scmp.lt.s32.totalorder %s2388_s22, %s2381_s25 }
  0xa9   : > { %p2385_p3 = pneg %p2384_p5  ;;  %p2391_p8 = por %p2390_p4, %p2389_p6 }
  0xab   : > { %p2392_p11 = pnand %p2391_p8, %p2385_p3 }
  0xad   : > { %2395 = shalt.err (!%p2392_p11)
}
  0xae   : > { %2124 = dma.hbm_to_vmem [thread:$0]  (!%p2735_p9), %s2807_s20, 128, %s495_s4, %s2749_s18  }
  0xaf   : > { %s505_s0 = scalar_lea.vmem [#allocation9], %s2730_s21  ;;  %s3171_s5 = sand.u32 1, %s2538_s28  }
  0xb0   : > { %s512_s1 = sshll.u32 %s505_s0, 4  ;;  %s502_s9 = scalar_lea.sflag [#allocation10], %s3171_s5  ;;  %s513_s1 = int_to_ptr.vmem [resolvable:$true] %s512_s1 }
  0xb1   : > { %s2396_s13 = scalar_lea.hbm %s2832_s11, 128  ;;  %s2401_s15 = scalar_lea.hbm %s3108_s3, 256 }
  0xb2   : > { %p2397_p7 = scmp.ne.s32.totalorder %s2832_s11, %s2396_s13  ;;  %p2402_p1 = scmp.lt.s32.totalorder %s2832_s11, %s3108_s3 }
  0xb3   : > { %p2403_p12 = scmp.lt.s32.totalorder %s2401_s15, %s2396_s13 }
  0xb4   : > { %p2399_p2 = pnand %p2397_p7, %p2755_p13 }
  0xb5   : > { %p2404_p10 = por %p2403_p12, %p2402_p1 }
  0xb6   : > { %p2400_p0 = pneg %p2399_p2 }
  0xb8   : > { %p2405_p5 = pnand %p2404_p10, %p2400_p0 }
  0xba   : > { %2408 = shalt.err (!%p2405_p5)
}
  0xbb   : > { %s2409_s18 = scalar_lea.vmem %s513_s1, 128  ;;  %s2549_s21 = smov [#allocation9]  }
  0xbc   : > { %p2410_p3 = scmp.ne.s32.totalorder %s513_s1, %s2409_s18  ;;  %s2414_s20 = sshll.u32 %s2549_s21, 4  ;;  %s2415_s20 = int_to_ptr.vmem [resolvable:$false] %s2414_s20 }
  0xbd   : > { %s2416_s4 = scalar_lea.vmem %s2415_s20, 256  ;;  %p2417_p8 = scmp.lt.s32.totalorder %s513_s1, %s2415_s20 }
  0xbe   : > { %p2412_p6 = pnand %p2410_p3, %p2755_p13  ;;  %p2418_p11 = scmp.lt.s32.totalorder %s2416_s4, %s2409_s18 }
  0xc0   : > { %p2413_p4 = pneg %p2412_p6  ;;  %p2419_p7 = por %p2418_p11, %p2417_p8 }
  0xc2   : > { %p2420_p2 = pnand %p2419_p7, %p2413_p4 }
  0xc4   : > { %2423 = shalt.err (!%p2420_p2)
}
  0xc5   : > { %2127 = dma.hbm_to_vmem [thread:$0]  (!%p2735_p9), %s2832_s11, 128, %s513_s1, %s502_s9  }
  0xc6   : > { %p3172_p0 = scmp.ne.s32.totalorder %s3153_s16, 0 }
  0xc7   : > { %s2873_s12 = sand.u32 (!%p3172_p0), 1, %s2530_s26   ;;  %p3173_p13 = scmp.ne.s32.totalorder (!%p3172_p0), %s3150_s14, 0 }
  0xc8   : > { %521 = sbr.rel (%p3172_p0) target bundleno = 2044 (0x7fc), region = 68  ;;  %s2876_s23 = sshll.u32 (!%p3172_p0), %s2873_s12, 3 }
  0xc9   : > { %s524_s6 = scalar_lea.sflag (!%p3172_p0), [#allocation4], %s2873_s12  ;;  %s527_s22 = scalar_lea.vmem (!%p3172_p0), [#allocation3], %s2876_s23 }
  0xcd   : > { %2493 = dma.done.wait (%p3173_p13), %s524_s6, 128  }
  0xce   : > { %2495 = vsyncadd (%p3173_p13), %s524_s6, 4294967168  ;;  %s532_s16 = sand.u32 1, %s2652_s29   ;;  %s536_s11 = scalar_lea.vmem [#allocation6], %s2876_s23 }
  0xcf   : > { %s533_s17 = scalar_lea.sflag [#allocation7], %s532_s16 }
  0xd0   : > { %2497 = dma.done.wait (%p3173_p13), %s533_s17, 256  }
  0xd1   : > { %2499 = vsyncadd (%p3173_p13), %s533_s17, 4294967040  ;;  %s545_s0 = scalar_lea.vmem [#allocation8], %s2876_s23  ;;  %s551_s1 = scalar_lea.sflag [#allocation10], %s532_s16 }
  0xd2   : > { %s554_s5 = scalar_lea.vmem [#allocation9], %s2876_s23 }
  0xd3   : > { %2501 = dma.done.wait (%p3173_p13), %s551_s1, 128  }
  0xd4   : > { %2503 = vsyncadd (%p3173_p13), %s551_s1, 4294967168  ;;  %p3174_p9 = scmp.eq.s32.totalorder %s2652_s29, 0 }
  0xd6   : > { %2505 = dma.done.wait (%p3174_p9), [#allocation10], 512   ;;  %p3175_p1 = pmov %p3174_p9 }
  0xd8   : > { %2507 = vsyncadd (%p3175_p1), [#allocation10], 4294966784  ;;  %p3176_p12 = pmov %p3175_p1 }
  0xd9   : > { %p3177_p10 = pmov %p3175_p1 }
  0xda   : > { %2509 = dma.done.wait (%p3176_p12), [#allocation13], 1024  }
  0xdb   : > { %2511 = vsyncadd (%p3177_p10), [#allocation13], 4294966272  ;;  %p3178_p5 = pmov %p3175_p1 }
  0xdc   : > { %p3179_p3 = pmov %p3175_p1 }
  0xdd   : > { %2513 = dma.done.wait (%p3178_p5), [#allocation16], 512  }
  0xde   : > { %2515 = vsyncadd (%p3179_p3), [#allocation16], 4294966784  ;;  %v2550_v0 = vmov 0.0   ;;  %vm2551_vm0 = vmmov 0   ;;  %v637_v1 = vld [vmem:[#allocation11 + $0x18] sm:$0xff]  ;;  %v636_v2 = vld [vmem:[#allocation11 + $0x10] sm:$0xff] }
  0xdf   : > { %1990 = vmatprep.subr.mxu0 %v2550_v0  ;;  %2001 = vmatprep.subr.mxu1 %v2550_v0  ;;  %v723_v3 = vld [vmem:[#allocation12 + $0x18] sm:$0xff]  ;;  %v722_v4 = vld [vmem:[#allocation12 + $0x10] sm:$0xff]  ;;  %v635_v5 = vld [vmem:[#allocation11 + $0x8] sm:$0xff]  ;;  %vm645_vm1 = vcmask 261120   ;;  %vm893_vm2 = vcmask 64512   ;;  %s2552_s13 = smov 120  }
  0xe0   : > { %1998 = vmatprep.mubr.msk.f32.mxu0 %vm2551_vm0, %v2550_v0  ;;  %2009 = vmatprep.mubr.msk.f32.mxu1 %vm2551_vm0, %v2550_v0  ;;  %v721_v6 = vld [vmem:[#allocation12 + $0x8] sm:$0xff]  ;;  %v634_v7 = vld [vmem:[#allocation11] sm:$0xff]  ;;  %v808_v9 = vld [vmem:[#allocation14 + $0x18] sm:$0xff]  ;;  %s3180_s15 = sld [smem:[#allocation38_spill]]  ;;  %s2553_s21 = smov 112   ;;  %vm1225_vm4 = vcmask 130112  }
  0xe1   : > { %1991 = vmatpush3.msra.mxu0 %v637_v1  ;;  %2002 = vmatpush3.msra.mxu1 %v723_v3  ;;  %v633_v8 = vld [vmem:[%s527_s22] sm:$0xff]  ;;  %v719_v11 = vld [vmem:[%s536_s11] sm:$0xff]  ;;  %s3181_s18 = sld [smem:[#allocation36_spill]]  ;;  %s2554_s20 = smov 104   ;;  %vm1396_vm5 = vcmask 195712   ;;  %vm1567_vm6 = vcmask 261312  }
  0xe2   : > { %1992 = vmatprep.subr.mxu0 %v2550_v0  ;;  %2003 = vmatprep.subr.mxu1 %v2550_v0  ;;  %v720_v10 = vld [vmem:[#allocation12] sm:$0xff]  ;;  %v807_v12 = vld [vmem:[#allocation14 + $0x10] sm:$0xff]  ;;  %v806_v13 = vld [vmem:[#allocation14 + $0x8] sm:$0xff]  ;;  %s1925_s4 = sshll.u32 %s2873_s12, 5  ;;  %s2555_s22 = smov 8  }
  0xe3   : > { %1993 = vmatpush3.msra.mxu0 %v636_v2  ;;  %2004 = vmatpush3.msra.mxu1 %v722_v4  ;;  %v805_v14 = vld [vmem:[#allocation14] sm:$0xff]  ;;  %v1928_v17 = vld [vmem:[%s3112_s7] ss:$0 sm:$0xff]  ;;  %s2982_s6 = scalar_lea.vmem [#allocation18], %s1925_s4  ;;  %s2556_s16 = smov 16  }
  0xe4   : > { %1994 = vmatprep.subr.mxu0 %v2550_v0  ;;  %2005 = vmatprep.subr.mxu1 %v2550_v0  ;;  %v804_v15 = vld [vmem:[%s545_s0] sm:$0xff]  ;;  %v890_v29 = vld [vmem:[%s554_s5] sm:$0xff]  ;;  %s2557_s17 = smov 24   ;;  %s3182_s11 = sld [smem:[#allocation31_spill]] }
  0xe5   : > { %1995 = vmatpush3.msra.mxu0 %v635_v5  ;;  %2006 = vmatpush3.msra.mxu1 %v721_v6  ;;  %vm891_vm3 = vcmp.eq.f32.partialorder %v890_v29, 0.0  ;;  %v1575_v29 = vld [vmem:[#allocation15 + $0x8] sm:$0xff]  ;;  %s1953_s0 = sshll.u32 %s2652_s29, 9  ;;  %s1691_s1 = sshll.u32 %s2982_s6, 4  ;;  %s3033_s1 = int_to_ptr.vmem [resolvable:$true] %s1691_s1 }
  0xe6   : > { %1996 = vmatprep.subr.mxu0 %v2550_v0  ;;  %2007 = vmatprep.subr.mxu1 %v2550_v0  ;;  %v1930_v22 = vld [vmem:[%s3180_s15] ss:$0 sm:$0xff]  ;;  %v892_v30 = vsel %vm891_vm3, -1e+20, %v2550_v0  ;;  %s3183_s9 = sld [smem:[#allocation41_spill]]  ;;  %s1665_s19 = scalar_lea.sflag [#allocation19], %s2873_s12 }
  0xe7   : > { %1997 = vmatpush3.msra.mxu0 %v634_v7  ;;  %2008 = vmatpush3.msra.mxu1 %v720_v10  ;;  %v1926_v24 = vld [vmem:[%s3181_s18] ss:$0 sm:$0xff]  ;;  %s2424_s24 = scalar_lea.vmem %s3033_s1, 512  ;;  %s2558_s15 = smov [#allocation18]  }
  0xe8   : > { %1999 = vmatmul.mubr.msk.f32.vlgmr.msra.gmra.mxu0 %vm645_vm1, %v633_v8  ;;  %2012 = vmatprep.subr.mxu0 %v2550_v0  ;;  %p2425_p6 = scmp.ne.s32.totalorder %s3033_s1, %s2424_s24  ;;  %s2428_s30 = sshll.u32 %s2558_s15, 4  ;;  %s2429_s30 = int_to_ptr.vmem [resolvable:$false] %s2428_s30 }
  0xe9   : > { %2013 = vmatpush3.msra.mxu0 %v808_v9  ;;  %2010 = vmatmul.mubr.msk.f32.vlgmr.msra.gmra.mxu1 %vm645_vm1, %v719_v11  ;;  %s2430_s25 = scalar_lea.vmem %s2429_s30, 1024  ;;  %p2431_p7 = scmp.lt.s32.totalorder %s3033_s1, %s2429_s30 }
  0xea   : > { %2014 = vmatprep.subr.mxu0 %v2550_v0  ;;  %2020 = vmatprep.mubr.msk.f32.mxu0 %vm2551_vm0, %v2550_v0  ;;  %p3184_p4 = scmp.ne.s32.totalorder %s3182_s11, 0  ;;  %p2432_p2 = scmp.lt.s32.totalorder %s2430_s25, %s2424_s24 }
  0xeb   : > { %2015 = vmatpush3.msra.mxu0 %v807_v12  ;;  %2023 = vmatprep.subr.mxu1 %v2550_v0 }
  0xec   : > { %2016 = vmatprep.subr.mxu0 %v2550_v0  ;;  %2025 = vmatprep.mubr.msk.f32.mxu1 %vm2551_vm0, %v2550_v0  ;;  %p2426_p8 = pnand %p2425_p6, %p3184_p4  ;;  %p2433_p0 = por %p2432_p2, %p2431_p7 }
  0xed   : > { %2017 = vmatpush3.msra.mxu0 %v806_v13 }
  0xee   : > { %2018 = vmatprep.subr.mxu0 %v2550_v0  ;;  %p2427_p11 = pneg %p2426_p8 }
  0xef   : > { %2019 = vmatpush3.msra.mxu0 %v805_v14 }
  0xf0   : > { %2021 = vmatmul.mubr.msk.f32.vlgmr.msra.gmra.mxu0 %vm645_vm1, %v804_v15  ;;  %2043 = vmatprep.subr.mxu0 %v2550_v0  ;;  %p2434_p13 = pnand %p2433_p0, %p2427_p11 }
  0xf1   : > { %2045 = vmatprep.mubr.msk.f32.mxu0 %vm2551_vm0, %v2550_v0 }
 0x1a8   : > { %v715_v16 = vpop.f32.mrf.mxu0 }
 0x1a9   : > { %v800_v19 = vpop.f32.mrf.mxu1  ;;  %v2953_v28 = vadd.f32 %v1926_v24, %v715_v16 }
 0x1aa   : > { %v2000_v18 = vpop.f32.mrf.mxu0  ;;  %v801_v20 = vadd.f32 %v1928_v17, %v800_v19 }
 0x1ab   : > { %v2011_v21 = vpop.f32.mrf.mxu1 }
 0x1ac   : > { %1057 = vrot.lane.b32.xlu1 %v801_v20, %s2552_s13  ;;  %2024 = vmatpush3.xpose.msk.msra.mxu1 %vm893_vm2, %v801_v20 }
 0x1ad   : > { %2028 = vmatprep.subr.mxu1 %v2550_v0 }
 0x1b0   : > { %v885_v23 = vpop.f32.mrf.mxu0 }
 0x1b1   : > { %v886_v25 = vadd.f32 %v1930_v22, %v885_v23 }
 0x1b2   : > { %v2022_v26 = vpop.f32.mrf.mxu0 }
 0x1b3   : > { %v889_v27 = vmul.f32 0.17677669, %v886_v25 }
 0x1b5   : > { %1055 = vrot.lane.b32.xlu1 %v889_v27, %s2552_s13  ;;  %2026 = vmatmul.mubr.msk.f32.vlgmr.msra.gmra.mxu1 %vm893_vm2, %v889_v27 }
 0x1b6   : > { %2029 = vmatpush3.msra.mxu1 %v2953_v28  ;;  %2030 = vmatprep.mubr.msk.f32.mxu1 %vm2551_vm0, %v2550_v0 }
 0x1b7   : > { %2033 = vmatprep.subr.mxu1 %v2550_v0 }
 0x1b9   : > { %1227 = vrot.lane.b32.xlu1 %v889_v27, %s2553_s21 }
 0x1bd   : > { %1400 = vrot.lane.b32.xlu1 %v801_v20, %s2554_s20 }
 0x1c1   : > { %1398 = vrot.lane.b32.xlu1 %v889_v27, %s2554_s20  ;;  %v1577_v27 = vld [vmem:[#allocation15 + $0x18] sm:$0xff] }
 0x21e   : > { %v1058_v40 = vpop.permute.xlu1 %1057 }
 0x227   : > { %v1056_v41 = vpop.permute.xlu1 %1055 }
 0x22b   : > { %v1228_v42 = vpop.permute.xlu1 %1227 }
 0x22f   : > { %v1401_v45 = vpop.permute.xlu1 %1400 }
 0x233   : > { %v1399_v46 = vpop.permute.xlu1 %1398 }
 0x275   : > { %v966_v31 = vpop.f32.mrf.mxu1 }
 0x276   : > { %v967_v32 = vadd.f32 %v966_v31, %v892_v30  ;;  %v1574_v31 = vld [vmem:[#allocation15] sm:$0xff] }
 0x277   : > { %v2027_v33 = vpop.f32.mrf.mxu1 }
 0x278   : > { %v970_v34 = vsel %vm893_vm2, %v967_v32, -inf }
 0x279   : > { %971 = vmax.xlane.f32.xlu0 %v970_v34 }
 0x302   : > { %v972_v35 = vpop.xlane.xlu0 %971 }
 0x303   : > { %v973_v36 = vsub.f32 %v967_v32, %v972_v35 }
 0x305   : > { %v974_v37 = vmul.f32 1.442695, %v973_v36 }
 0x307   : > { %2192 = vpow2.f32 %v974_v37 }
 0x314   : > { %v2193_v38 = vpop.eup %2192 }
 0x315   : > { %v976_v39 = vsel %vm893_vm2, %v2193_v38, 0.0 }
 0x316   : > { %977 = vadd.xlane.f32.xlu0 %v976_v39 }
 0x32c   : > { %1229 = vrot.lane.b32.xlu0 %v801_v20, %s2553_s21 }
 0x39f   : > { %v978_v43 = vpop.xlane.xlu0 %977 }
 0x3a0   : > { %2194 = vrcp.f32 %v978_v43 }
 0x3a3   : > { %v1230_v44 = vpop.permute.xlu0 %1229 }
 0x3a4   : > { %2044 = vmatpush3.xpose.msk.msra.mxu0 %vm893_vm2, %v1230_v44 }
 0x3a5   : > { %2053 = vmatprep.subr.mxu0 %v2550_v0 }
 0x3a7   : > { %2046 = vmatmul.mubr.msk.f32.vlgmr.msra.gmra.mxu0 %vm893_vm2, %v1228_v42 }
 0x3a8   : > { %2054 = vmatpush3.xpose.msk.msra.mxu0 %vm893_vm2, %v1401_v45  ;;  %2055 = vmatprep.mubr.msk.f32.mxu0 %vm2551_vm0, %v2550_v0 }
 0x3a9   : > { %2063 = vmatprep.subr.mxu0 %v2550_v0 }
 0x3ab   : > { %2056 = vmatmul.mubr.msk.f32.vlgmr.msra.gmra.mxu0 %vm893_vm2, %v1399_v46 }
 0x3ac   : > { %2071 = vmatprep.mubr.msk.f32.mxu0 %vm2551_vm0, %v2550_v0  ;;  %2064 = vmatpush3.msra.mxu0 %v1577_v27 }
 0x3ad   : > { %v2195_v47 = vpop.eup %2194  ;;  %2065 = vmatprep.subr.mxu0 %v2550_v0 }
 0x3ae   : > { %v980_v48 = vmul.f32 %v2195_v47, %v2193_v38 }
 0x3b0   : > { %2031 = vmatmul.mubr.msk.f32.vlgmr.msra.gmra.mxu1 %vm893_vm2, %v980_v48  ;;  %1569 = vst.msk [vmem:[%s2982_s6] sm:$0xff] %vm893_vm2, %v980_v48 }
 0x3b1   : > { %2034 = vmatpush3.xpose.msk.msra.mxu1 %vm893_vm2, %v1058_v40  ;;  %2035 = vmatprep.mubr.msk.f32.mxu1 %vm2551_vm0, %v2550_v0 }
 0x3b2   : > { %2038 = vmatprep.subr.mxu1 %v2550_v0 }
 0x3b4   : > { %2036 = vmatmul.mubr.msk.f32.vlgmr.msra.gmra.mxu1 %vm893_vm2, %v1056_v41 }
 0x3b5   : > { %2040 = vmatprep.mubr.msk.f32.mxu1 %vm2551_vm0, %v2550_v0 }
 0x467   : > { %v1301_v49 = vpop.f32.mrf.mxu0 }
 0x468   : > { %v1302_v50 = vadd.f32 %v1301_v49, %v892_v30 }
 0x469   : > { %v2047_v51 = vpop.f32.mrf.mxu0 }
 0x46a   : > { %v1305_v52 = vsel %vm893_vm2, %v1302_v50, -inf }
 0x46b   : > { %1306 = vmax.xlane.f32.xlu0 %v1305_v52  ;;  %v1472_v53 = vpop.f32.mrf.mxu0 }
 0x46c   : > { %v1473_v60 = vadd.f32 %v1472_v53, %v892_v30 }
 0x46d   : > { %v2057_v54 = vpop.f32.mrf.mxu0 }
 0x46e   : > { %v1476_v62 = vsel %vm893_vm2, %v1473_v60, -inf }
 0x470   : > { %v1050_v55 = vpop.f32.mrf.mxu1 }
 0x471   : > { %1054 = vst.msk [vmem:[#allocation2] sm:$0xff] %vm893_vm2, %v1050_v55 }
 0x472   : > { %v2032_v56 = vpop.f32.mrf.mxu1 }
 0x474   : > { %v1129_v57 = vpop.f32.mrf.mxu1 }
 0x475   : > { %v1130_v58 = vadd.f32 %v1129_v57, %v892_v30 }
 0x476   : > { %v2037_v59 = vpop.f32.mrf.mxu1 }
 0x477   : > { %v1133_v61 = vsel %vm893_vm2, %v1130_v58, -inf }
 0x478   : > { %1134 = vmax.xlane.f32.xlu1 %v1133_v61 }
 0x47c   : > { %1477 = vmax.xlane.f32.xlu1 %v1476_v62 }
 0x4f4   : > { %v1307_v63 = vpop.xlane.xlu0 %1306 }
 0x4f5   : > { %v1308_v1 = vsub.f32 %v1302_v50, %v1307_v63 }
 0x4f7   : > { %v1309_v2 = vmul.f32 1.442695, %v1308_v1 }
 0x4f9   : > { %2196 = vpow2.f32 %v1309_v2 }
 0x501   : > { %v1135_v3 = vpop.xlane.xlu1 %1134 }
 0x502   : > { %v1136_v11 = vsub.f32 %v1130_v58, %v1135_v3 }
 0x504   : > { %v1137_v12 = vmul.f32 1.442695, %v1136_v11 }
 0x505   : > { %v1478_v4 = vpop.xlane.xlu1 %1477 }
 0x506   : > { %v2197_v5 = vpop.eup %2196  ;;  %v1479_v6 = vsub.f32 %v1473_v60, %v1478_v4 }
 0x507   : > { %v1311_v7 = vsel %vm893_vm2, %v2197_v5, 0.0 }
 0x508   : > { %v1480_v8 = vmul.f32 1.442695, %v1479_v6  ;;  %1312 = vadd.xlane.f32.xlu0 %v1311_v7 }
 0x50a   : > { %2198 = vpow2.f32 %v1480_v8 }
 0x50b   : > { %2200 = vpow2.f32 %v1137_v12 }
 0x517   : > { %v2199_v9 = vpop.eup %2198 }
 0x518   : > { %v1482_v10 = vsel %vm893_vm2, %v2199_v9, 0.0  ;;  %v2201_v13 = vpop.eup %2200 }
 0x519   : > { %1483 = vadd.xlane.f32.xlu1 %v1482_v10  ;;  %v1139_v14 = vsel %vm893_vm2, %v2201_v13, 0.0 }
 0x51e   : > { %1145 = vrot.lane.b32.xlu0 %v2953_v28, %s2552_s13  ;;  %s3031_s13 = scalar_lea.hbm %s3183_s9, %s1953_s0 }
 0x52a   : > { %1316 = vrot.lane.b32.xlu1 %v2953_v28, %s2553_s21 }
 0x54e   : > { %1140 = vadd.xlane.f32.xlu1 %v1139_v14 }
 0x55f   : > { %1487 = vrot.lane.b32.xlu1 %v2953_v28, %s2554_s20  ;;  %v1576_v28 = vld [vmem:[#allocation15 + $0x10] sm:$0xff] }
 0x560   : > { %2066 = vmatpush3.msra.mxu0 %v1576_v28 }
 0x561   : > { %2067 = vmatprep.subr.mxu0 %v2550_v0 }
 0x562   : > { %2068 = vmatpush3.msra.mxu0 %v1575_v29 }
 0x563   : > { %2069 = vmatprep.subr.mxu0 %v2550_v0 }
 0x564   : > { %2070 = vmatpush3.msra.mxu0 %v1574_v31 }
 0x591   : > { %v1313_v15 = vpop.xlane.xlu0 %1312 }
 0x592   : > { %2202 = vrcp.f32 %v1313_v15 }
 0x595   : > { %v1146_v16 = vpop.permute.xlu0 %1145 }
 0x596   : > { %2039 = vmatpush3.msra.mxu1 %v1146_v16 }
 0x597   : > { %2048 = vmatprep.subr.mxu1 %v2550_v0 }
 0x59f   : > { %v2203_v17 = vpop.eup %2202 }
 0x5a0   : > { %v1315_v18 = vmul.f32 %v2203_v17, %v2197_v5 }
 0x5a2   : > { %v1484_v19 = vpop.xlane.xlu1 %1483  ;;  %1571 = vst.msk [vmem:[%s2982_s6 + $0x10] sm:$0xff] %vm893_vm2, %v1315_v18 }
 0x5a3   : > { %2204 = vrcp.f32 %v1484_v19 }
 0x5a6   : > { %v1317_v22 = vpop.permute.xlu1 %1316 }
 0x5b0   : > { %v2205_v20 = vpop.eup %2204 }
 0x5b1   : > { %v1486_v21 = vmul.f32 %v2205_v20, %v2199_v9 }
 0x5b3   : > { %1572 = vst.msk [vmem:[%s2982_s6 + $0x18] sm:$0xff] %vm893_vm2, %v1486_v21 }
 0x5d7   : > { %v1141_v23 = vpop.xlane.xlu1 %1140 }
 0x5d8   : > { %2206 = vrcp.f32 %v1141_v23 }
 0x5db   : > { %v1488_v26 = vpop.permute.xlu1 %1487 }
 0x5e5   : > { %v2207_v24 = vpop.eup %2206 }
 0x5e6   : > { %v1143_v25 = vmul.f32 %v2207_v24, %v2201_v13 }
 0x5e8   : > { %2041 = vmatmul.mubr.msk.f32.vlgmr.msra.gmra.mxu1 %vm893_vm2, %v1143_v25  ;;  %1570 = vst.msk [vmem:[%s2982_s6 + $0x8] sm:$0xff] %vm893_vm2, %v1143_v25 }
 0x5e9   : > { %2049 = vmatpush3.msra.mxu1 %v1317_v22  ;;  %2050 = vmatprep.mubr.msk.f32.mxu1 %vm2551_vm0, %v2550_v0 }
 0x5ea   : > { %2058 = vmatprep.subr.mxu1 %v2550_v0 }
 0x5ec   : > { %2051 = vmatmul.mubr.msk.f32.vlgmr.msra.gmra.mxu1 %vm893_vm2, %v1315_v18 }
 0x5ed   : > { %2059 = vmatpush3.msra.mxu1 %v1488_v26  ;;  %2060 = vmatprep.mubr.msk.f32.mxu1 %vm2551_vm0, %v2550_v0 }
 0x5f0   : > { %2061 = vmatmul.mubr.msk.f32.vlgmr.msra.gmra.mxu1 %vm893_vm2, %v1486_v21 }
 0x6a8   : > { %v1217_v30 = vpop.f32.mrf.mxu1 }
 0x6a9   : > { %1222 = vrot.lane.b32.xlu0 %v1217_v30, %s2555_s22 }
 0x6aa   : > { %v2042_v32 = vpop.f32.mrf.mxu1 }
 0x6ac   : > { %v1388_v33 = vpop.f32.mrf.mxu1 }
 0x6ad   : > { %1393 = vrot.lane.b32.xlu1 %v1388_v33, %s2556_s16 }
 0x6ae   : > { %v2052_v34 = vpop.f32.mrf.mxu1 }
 0x6b0   : > { %v1559_v35 = vpop.f32.mrf.mxu1 }
 0x6b1   : > { %1564 = vrot.lane.b32.xlu0 %v1559_v35, %s2557_s17 }
 0x6b2   : > { %v2062_v36 = vpop.f32.mrf.mxu1 }
 0x71b   : > { %v1223_v37 = vpop.permute.xlu0 %1222 }
 0x71c   : > { %1226 = vst.msk [vmem:[#allocation2] sm:$0xff] %vm1225_vm4, %v1223_v37 }
 0x71f   : > { %v1394_v38 = vpop.permute.xlu1 %1393 }
 0x720   : > { %1397 = vst.msk [vmem:[#allocation2] sm:$0xff] %vm1396_vm5, %v1394_v38 }
 0x723   : > { %v1565_v0 = vpop.permute.xlu0 %1564 }
 0x724   : > { %1568 = vst.msk [vmem:[#allocation2] sm:$0xff] %vm1567_vm6, %v1565_v0 }
 0x72b   : > { %v1573_v39 = vld [vmem:[#allocation2] sm:$0xff] }
 0x72c   : > { %2072 = vmatmul.mubr.msk.f32.vlgmr.msra.gmra.mxu0 %vm645_vm1, %v1573_v39 }
 0x72d   : > { %2437 = shalt.err (!%p2434_p13)
}
 0x72e   : > { %s2438_s18 = scalar_lea.hbm %s3031_s13, 512  ;;  %s2442_s4 = scalar_lea.hbm %s3183_s9, 1024 }
 0x72f   : > { %p2439_p9 = scmp.ne.s32.totalorder %s3031_s13, %s2438_s18  ;;  %p2443_p10 = scmp.lt.s32.totalorder %s3031_s13, %s3183_s9 }
 0x730   : > { %p2444_p5 = scmp.lt.s32.totalorder %s2442_s4, %s2438_s18 }
 0x731   : > { %p2440_p1 = pnand %p2439_p9, %p3184_p4 }
 0x732   : > { %p2445_p3 = por %p2444_p5, %p2443_p10 }
 0x733   : > { %p2441_p12 = pneg %p2440_p1 }
 0x735   : > { %p2446_p6 = pnand %p2445_p3, %p2441_p12 }
 0x737   : > { %2449 = shalt.err (!%p2446_p6)
}
 0x738   : > { %s2559_s17 = smov 128   ;;  %s3185_s14 = sld [smem:[#allocation39_spill]] }
 0x739   : > { %2099 = dma.vmem_to_hbm [thread:$0]  (%p3184_p4), %s3033_s1, 512, %s3031_s13, %s1665_s19, %s2559_s17, %s2559_s17, %s2555_s22  }
 0x73a   : > { %s1948_s24 = sshll.u32 %s2652_s29, 7  ;;  %s625_s15 = scalar_lea.vmem [#allocation17], %s2876_s23 }
 0x73b   : > { %s1678_s30 = sshll.u32 %s625_s15, 4  ;;  %s3186_s21 = sld [smem:[#allocation40_spill]]  ;;  %s1679_s30 = int_to_ptr.vmem [resolvable:$true] %s1678_s30 }
 0x73c   : > { %s1660_s4 = scalar_lea.sflag [#allocation5], %s2873_s12  ;;  %s2450_s22 = scalar_lea.vmem %s1679_s30, 128 }
 0x73d   : > { %p2451_p8 = scmp.ne.s32.totalorder %s1679_s30, %s2450_s22  ;;  %s2560_s29 = smov [#allocation17]  }
 0x73e   : > { %v1944_v40 = vld [vmem:[%s3185_s14] ss:$0 sm:$0xff]  ;;  %s2454_s23 = sshll.u32 %s2560_s29, 4  ;;  %s2455_s23 = int_to_ptr.vmem [resolvable:$false] %s2454_s23 }
 0x73f   : > { %p2452_p11 = pnand %p2451_p8, %p3184_p4  ;;  %s2456_s1 = scalar_lea.vmem %s2455_s23, 256 }
 0x740   : > { %p2457_p2 = scmp.lt.s32.totalorder %s1679_s30, %s2455_s23  ;;  %p2458_p0 = scmp.lt.s32.totalorder %s2456_s1, %s2450_s22 }
 0x741   : > { %s3067_s20 = scalar_lea.hbm %s3186_s21, %s1948_s24  ;;  %p2453_p7 = pneg %p2452_p11 }
 0x742   : > { %p2459_p13 = por %p2458_p0, %p2457_p2 }
 0x744   : > { %p2460_p9 = pnand %p2459_p13, %p2453_p7 }
 0x7ec   : > { %v1654_v41 = vpop.f32.mrf.mxu0 }
 0x7ed   : > { %v1655_v42 = vadd.f32 %v1944_v40, %v1654_v41 }
 0x7ee   : > { %v2073_v43 = vpop.f32.mrf.mxu0 }
 0x7ef   : > { %1658 = vst.msk [vmem:[%s625_s15] sm:$0xff] %vm645_vm1, %v1655_v42 }
 0x7f0   : > { %2463 = shalt.err (!%p2460_p9)
}
 0x7f1   : > { %s2464_s13 = scalar_lea.hbm %s3067_s20, 128  ;;  %s2468_s6 = scalar_lea.hbm %s3186_s21, 256 }
 0x7f2   : > { %p2465_p1 = scmp.ne.s32.totalorder %s3067_s20, %s2464_s13  ;;  %p2469_p5 = scmp.lt.s32.totalorder %s3067_s20, %s3186_s21 }
 0x7f3   : > { %p2470_p3 = scmp.lt.s32.totalorder %s2468_s6, %s2464_s13 }
 0x7f4   : > { %p2466_p12 = pnand %p2465_p1, %p3184_p4 }
 0x7f5   : > { %p2471_p6 = por %p2470_p3, %p2469_p5 }
 0x7f6   : > { %p2467_p10 = pneg %p2466_p12 }
 0x7f8   : > { %p2472_p8 = pnand %p2471_p6, %p2467_p10 }
 0x7fa   : > { %2475 = shalt.err (!%p2472_p8)
}
 0x7fb   : > { %2098 = dma.vmem_to_hbm [thread:$0]  (%p3184_p4), %s1679_s30, 128, %s3067_s20, %s1660_s4  }
 0x7fc PF: > { %s3187_s0 = sld [smem:[#allocation28_spill]]  ;;  %p3190_p7 = scmp.ge.s32.totalorder %s2538_s28, 2 }
 0x7fd   : > { %s3188_s5 = sld [smem:[#allocation29_spill]] }
 0x802   : > { %s1706_s14 = sand.u32 1, %s3187_s0  }
 0x803   : > { %p3189_p11 = scmp.ne.s32.totalorder %s3188_s5, 0  ;;  %s1707_s24 = scalar_lea.sflag [#allocation5], %s1706_s14 }
 0x805   : > { %p2129_p2 = pnand %p3190_p7, %p3189_p11 }
 0x807   : > { %p2130_p0 = pneg %p2129_p2 }
 0x809   : > { %2517 = dma.done.wait (%p2130_p0), %s1707_s24, 128  }
 0x80a   : > { %2519 = vsyncadd (%p2130_p0), %s1707_s24, 4294967168  ;;  %s1716_s15 = scalar_lea.sflag [#allocation19], %s1706_s14 }
 0x80b   : > { %2521 = dma.done.wait (%p2130_p0), %s1716_s15, 512  }
 0x80c   : > { %2523 = vsyncadd (%p2130_p0), %s1716_s15, 4294966784  ;;  %s3191_s28 = sld [smem:[#allocation30_spill]]  ;;  %s3193_s25 = smov %s2530_s26 }
 0x80d   : > { %s3192_s11 = sld [smem:[#allocation32_spill]]  ;;  %s3194_s26 = smov %s2534_s27 }
 0x812   : > { %p38_p4 = scmp.ge.s32.totalorder %s3191_s28, 4  }
 0x813   : > { %s3195_s27 = smov %s3192_s11 }
 0x814   :  { %40 = sbr.rel (!%p38_p4) target bundleno = 23 (0x17), region = 183 }
 0x819   :  { %1721 = vsyncpa [#allocation4], 1 }
 0x81a   :  { %1723 = vsyncpa [#allocation4 + $0x1], 1 }
 0x81b   :  { %1724 = vsyncpa [#allocation7], 1 }
 0x81c   :  { %1726 = vsyncpa [#allocation7 + $0x1], 1 }
 0x81d   :  { %1727 = vsyncpa [#allocation10], 1 }
 0x81e   :  { %1729 = vsyncpa [#allocation10 + $0x1], 1 }
 0x81f   :  { %1730 = vsyncpa [#allocation13], 1 }
 0x820   :  { %1731 = vsyncpa [#allocation16], 1 }
 0x821   :  { %1732 = vsyncpa [#allocation5], 1 }
 0x822   :  { %1734 = vsyncpa [#allocation5 + $0x1], 1 }
 0x823   :  { %1735 = vsyncpa [#allocation19], 1 }
 0x824   :  { %1737 = vsyncpa [#allocation19 + $0x1], 1 }

</bundles_post_ra>
